<compile_context>
chip_gen: v6e
topology: v6e:2x2x1
jax: 0.10.0
libtpu: 0.0.40
codegen_flags: <defaults>
</compile_context>

<pallas_src>
import functools
from collections import OrderedDict

import numpy as np
import jax
import jax.numpy as jnp
from jax.experimental import pallas as pl
from jax.experimental.pallas import tpu as pltpu

SQRT_HALF = float(0.5 ** 0.5)

# in-kernel RNG availability (fallback keeps the script runnable on older jax)
_HAS_KERNEL_RNG = hasattr(pltpu, "prng_seed") and hasattr(pltpu, "stateful_normal")


def _cdiv(a, b):
    return -(-a // b)


def _round_up(x, m):
    return _cdiv(x, m) * m


# --------------------------------------------------------------------------------------
# Per-split persistent packed layout (built once, reused by every sample() call)
# --------------------------------------------------------------------------------------
def _plan_layout(d, *, k, target_lanes=1024, vmem_budget_bytes=12 << 20):
    """Pick (lanes, rows_padded, block_rows) for ONE split of length d.

    block_rows is chosen so the double-buffered live VMEM (bf16 cov + f32 mean/std +
    f32 sample/z1 outputs) stays under ~12 MiB -> safe on v5e's 16 MiB default scoped
    VMEM and well inside v7x's 64 MiB physical VMEM; at real ResNet scale this yields
    block_rows=128 (the v6e/v7x sweet spot), at demo scale 16.
    """
    lanes = min(target_lanes, _round_up(max(_cdiv(d, 8), 1), 128))
    rows = max(1, _cdiv(d, lanes))
    per_row_bytes = k * lanes * 2 + 4 * lanes * 4          # bf16 cov + 4 f32 streams
    max_block_rows = max(16, vmem_budget_bytes // (2 * per_row_bytes))
    row_cap = _round_up(rows, 16)                          # don't pad tiny splits up
    block_rows = 16
    for cand in (16, 32, 64, 128, 256):
        if cand <= max_block_rows and cand <= row_cap:
            block_rows = cand
    rows_p = _round_up(rows, block_rows)
    return lanes, rows_p, block_rows


def _pack_vec(v, rows_p, lanes):
    d = v.shape[0]
    return jnp.pad(v.astype(jnp.float32), (0, rows_p * lanes - d)).reshape(rows_p, lanes)


def _pack_cov_blocked(c, rows_p, lanes, block_rows):
    """(K, d) f32 -> (rows_p//block_rows, K, block_rows, lanes) bf16 (contiguous per step)."""
    k, d = c.shape
    c_p = jnp.pad(c.astype(jnp.float32), ((0, 0), (0, rows_p * lanes - d)))
    c_p = c_p.reshape(k, rows_p // block_rows, block_rows, lanes)
    c_p = jnp.transpose(c_p, (1, 0, 2, 3))                 # (NB, K, BR, C)
    return c_p.astype(jnp.bfloat16)


# --------------------------------------------------------------------------------------
# Pallas kernels: SABMA.sample() for one parameter split
# --------------------------------------------------------------------------------------
def _sabma_sample_kernel_rng(z2_ref, seed_ref, mean_ref, std_ref, cov_ref,
                             out_ref, z1_ref, *, K):
    """z1 generated in-kernel; cov stored bf16 and upcast per k-slice."""
    # Block-deterministic seed: independent of which TensorCore runs the block.
    pltpu.prng_seed(seed_ref[0] + pl.program_id(0))
    z1 = pltpu.stateful_normal(out_ref.shape, jnp.float32)
    # Low-rank term: K-step scalar x vector MAC on the VPU; z2 (SMEM) already carries
    # the sqrt(0.5)/sqrt(K-1) scale.
    acc = z2_ref[0] * cov_ref[0].astype(jnp.float32)
    for k in range(1, K):
        acc = acc + z2_ref[k] * cov_ref[k].astype(jnp.float32)
    z1_ref[...] = z1
    out_ref[...] = mean_ref[...] + std_ref[...] * z1 + acc


def _sabma_sample_kernel_hostz1(z2_ref, mean_ref, std_ref, cov_ref, z1_ref,
                                out_ref, *, K):
    """Fallback: z1 provided as a packed f32 input."""
    acc = z2_ref[0] * cov_ref[0].astype(jnp.float32)
    for k in range(1, K):
        acc = acc + z2_ref[k] * cov_ref[k].astype(jnp.float32)
    out_ref[...] = mean_ref[...] + std_ref[...] * z1_ref[...] + acc


def sabma_sample_split(mean_pk, std_pk, cov_pk, z2, *, seed, fallback_key, K, block_rows):
    """Sample one split.

    mean_pk / std_pk : (Rp, C) f32   (std_pk = sqrt(0.5)*exp(log_std), zero-padded)
    cov_pk           : (Rp//block_rows, K, block_rows, C) bf16
    z2               : (K,) f32 raw draws (mean = z_scale, std = 1)
    Returns (sample_pk, z1_pk), both (Rp, C) f32.
    """
    Rp, C = mean_pk.shape
    NB = Rp // block_rows
    cov_scale = SQRT_HALF * (1.0 / float(np.sqrt(K - 1)) if K > 1 else 1.0)
    z2_scaled = (z2 * cov_scale).astype(jnp.float32)
    cparams = pltpu.CompilerParams(dimension_semantics=("parallel",))

    if _HAS_KERNEL_RNG:
        try:
            kern = functools.partial(_sabma_sample_kernel_rng, K=K)
            sample_pk, z1_pk = pl.pallas_call(
                kern,
                out_shape=(jax.ShapeDtypeStruct((Rp, C), jnp.float32),
                           jax.ShapeDtypeStruct((Rp, C), jnp.float32)),
                grid_spec=pltpu.PrefetchScalarGridSpec(
                    num_scalar_prefetch=2,                  # z2_scaled, seed -> SMEM
                    grid=(NB,),
                    in_specs=[
                        pl.BlockSpec((block_rows, C), lambda i, z2r, sr: (i, 0)),    # mean
                        pl.BlockSpec((block_rows, C), lambda i, z2r, sr: (i, 0)),    # std
                        pl.BlockSpec((None, K, block_rows, C),                       # cov
                                     lambda i, z2r, sr: (i, 0, 0, 0)),
                    ],
                    out_specs=[
                        pl.BlockSpec((block_rows, C), lambda i, z2r, sr: (i, 0)),    # sample
                        pl.BlockSpec((block_rows, C), lambda i, z2r, sr: (i, 0)),    # z1
                    ],
                ),
                compiler_params=cparams,
            )(z2_scaled, jnp.asarray([seed], jnp.int32), mean_pk, std_pk, cov_pk)
            jax.block_until_ready(sample_pk)
            return sample_pk, z1_pk
        except Exception:
            pass  # fall back to host-side z1 below

    z1_pk = jax.random.normal(fallback_key, (Rp, C), jnp.float32)
    kern = functools.partial(_sabma_sample_kernel_hostz1, K=K)
    sample_pk = pl.pallas_call(
        kern,
        out_shape=jax.ShapeDtypeStruct((Rp, C), jnp.float32),
        grid_spec=pltpu.PrefetchScalarGridSpec(
            num_scalar_prefetch=1,                          # z2_scaled -> SMEM
            grid=(NB,),
            in_specs=[
                pl.BlockSpec((block_rows, C), lambda i, z2r: (i, 0)),                # mean
                pl.BlockSpec((block_rows, C), lambda i, z2r: (i, 0)),                # std
                pl.BlockSpec((None, K, block_rows, C), lambda i, z2r: (i, 0, 0, 0)), # cov
                pl.BlockSpec((block_rows, C), lambda i, z2r: (i, 0)),                # z1
            ],
            out_specs=pl.BlockSpec((block_rows, C), lambda i, z2r: (i, 0)),
        ),
        compiler_params=cparams,
    )(z2_scaled, mean_pk, std_pk, cov_pk, z1_pk)
    return sample_pk, z1_pk


# --------------------------------------------------------------------------------------
# Pallas kernel: classifier-head forward (the part of functional_call we can express)
# --------------------------------------------------------------------------------------
def _linear_kernel(x_ref, w_ref, b_ref, o_ref):
    o_ref[...] = (jnp.dot(x_ref[...], w_ref[...],
                          preferred_element_type=jnp.float32) + b_ref[...])


def linear_head(x, w, b):
    """x: (B, F); w: (C, F) torch fc.weight layout; b: (C,) -> logits (B, C).

    Padded to (8-sublane, 128-lane) dense blocks so the output store is unmasked.
    At demo size this matmul is trivially small and launch overhead dominates; kept in
    Pallas to demonstrate the sampled-weight forward.  At real head sizes, tile toward
    256-wide blocks (v6e/v7x MXU) with a K-accumulator grid.
    """
    x = x.astype(jnp.float32)
    B, F = x.shape
    C = w.shape[0]
    Bp, Fp, Cp = _round_up(B, 8), _round_up(F, 128), _round_up(C, 128)
    xp = jnp.pad(x, ((0, Bp - B), (0, Fp - F)))
    wp = jnp.pad(w.astype(jnp.float32), ((0, Cp - C), (0, Fp - F))).T      # (Fp, Cp)
    bp = jnp.pad(b.astype(jnp.float32), (0, Cp - C)).reshape(1, Cp)
    out = pl.pallas_call(
        _linear_kernel,
        out_shape=jax.ShapeDtypeStruct((Bp, Cp), jnp.float32),
        grid=(1,),
        in_specs=[pl.BlockSpec((Bp, Fp), lambda i: (0, 0)),
                  pl.BlockSpec((Fp, Cp), lambda i: (0, 0)),
                  pl.BlockSpec((1, Cp), lambda i: (0, 0))],
        out_specs=pl.BlockSpec((Bp, Cp), lambda i: (0, 0)),
    )(xp, wp, bp)
    return out[:B, :C]


# --------------------------------------------------------------------------------------
# Glue: deterministic SABMA.__init__ parameter construction (pretrained_set='source',
# src_bnn='swag', tr_layer='nl_ll', diag_only=False) + one-time packed layout build
# --------------------------------------------------------------------------------------
def build_sabma_state(key, *, low_rank=8, alpha=1e-4, var_clamp=1e-16,
                      var_scale=1.0, cov_scale=1.0):
    # synthetic ResNet-like backbone parameter list (name, shape)
    backbone = OrderedDict([
        ("conv1.weight", (4, 3, 3, 3)),
        ("bn1.weight", (4,)),
        ("bn1.bias", (4,)),
        ("layer1.0.conv1.weight", (8, 4, 3, 3)),
        ("layer1.0.bn1.weight", (8,)),
        ("layer1.0.bn1.bias", (8,)),
        ("fc.weight", (10, 32)),
        ("fc.bias", (10,)),
    ])
    classifier_num = int(np.prod((10, 32)) + 10)            # fc params

    tr_idx, frz_idx = [], []
    offset = 0
    for name, shp in backbone.items():
        n = int(np.prod(shp))
        (tr_idx if ("bn" in name or "fc" in name) else frz_idx).extend(
            range(offset, offset + n))
        offset += n
    full_num = offset
    tr_idx = jnp.asarray(tr_idx, dtype=jnp.int32)
    frz_idx = jnp.asarray(frz_idx, dtype=jnp.int32)

    k_mean, k_var, k_cov = jax.random.split(key, 3)
    src_num = full_num - classifier_num
    w_mean_src = 0.1 * jax.random.normal(k_mean, (src_num,), jnp.float32)
    w_var_src = jnp.clip(0.01 * jax.random.uniform(k_var, (src_num,), jnp.float32),
                         var_clamp, None)
    w_cov_src = 0.05 * jax.random.normal(k_cov, (low_rank, src_num), jnp.float32)

    # pretrained_set == 'source': append classifier slots
    w_mean = jnp.concatenate([w_mean_src, jnp.zeros((classifier_num,), jnp.float32)])
    w_var = jnp.concatenate([w_var_src, alpha * jnp.ones((classifier_num,), jnp.float32)])
    w_cov = jnp.concatenate(
        [w_cov_src, (alpha ** 0.5) * jnp.zeros((low_rank, classifier_num), jnp.float32)],
        axis=1)

    def _split_state(idx):
        mean = w_mean[idx]
        log_std = 0.5 * jnp.log(w_var[idx] * var_scale)
        cov_sqrt = w_cov[:, idx] * cov_scale
        d = int(mean.shape[0])
        lanes, rows_p, block_rows = _plan_layout(d, k=low_rank)
        return dict(
            mean=mean, log_std=log_std, cov_sqrt=cov_sqrt, d=d,
            lanes=lanes, rows_p=rows_p, block_rows=block_rows,
            mean_pk=_pack_vec(mean, rows_p, lanes),
            # precomputed sqrt(0.5)*exp(log_std): zero in padding -> padded samples are 0
            std_pk=_pack_vec(SQRT_HALF * jnp.exp(log_std), rows_p, lanes),
            cov_pk=_pack_cov_blocked(cov_sqrt, rows_p, lanes, block_rows),
        )

    return dict(tr=_split_state(tr_idx), frz=_split_state(frz_idx),
                low_rank=low_rank, classifier_num=classifier_num)


def sample_ref(mean, log_std, cov_sqrt, z1, z2):
    """Pure-JAX reference of SABMA.sample()."""
    K = cov_sqrt.shape[0]
    rand = jnp.exp(log_std) * z1
    cov = cov_sqrt.T @ z2
    if K > 1:
        cov = cov / np.sqrt(K - 1)
    return mean + SQRT_HALF * (rand + cov)


if __name__ == "__main__":
    key = jax.random.PRNGKey(0)
    k_state, k_z2t, k_z2f, k_fb_t, k_fb_f, k_x = jax.random.split(key, 6)

    state = build_sabma_state(k_state, low_rank=8)
    K = state["low_rank"]
    z_scale = 1.0

    # torch .normal_(z_scale) sets MEAN=z_scale, std=1
    z2_tr = z_scale + jax.random.normal(k_z2t, (K,), jnp.float32)
    z2_frz = z_scale + jax.random.normal(k_z2f, (K,), jnp.float32)

    # ---- sample() for each split (per-split layouts, per-split pallas_call) ----------
    results = {}
    for name, z2, seed, fb_key in (("tr", z2_tr, 12345, k_fb_t),
                                   ("frz", z2_frz, 67890, k_fb_f)):
        sp = state[name]
        sample_pk, z1_pk = sabma_sample_split(
            sp["mean_pk"], sp["std_pk"], sp["cov_pk"], z2,
            seed=seed, fallback_key=fb_key, K=K, block_rows=sp["block_rows"])
        jax.block_until_ready((sample_pk, z1_pk))
        d = sp["d"]
        sample = sample_pk.reshape(-1)[:d]
        z1 = z1_pk.reshape(-1)[:d]

        # padded region of the packed sample slab must be exactly zero (safe to reuse)
        pad_tail = np.asarray(sample_pk).reshape(-1)[d:]
        assert pad_tail.size == 0 or np.allclose(pad_tail, 0.0)

        # z1 sanity (catches a broken in-kernel RNG; generous bounds, no flake risk)
        z1_np = np.asarray(z1)
        assert abs(float(z1_np.mean())) < 0.4
        assert 0.5 < float(z1_np.std()) < 1.5

        # tight check vs bf16-stored-cov semantics; loose check vs full-f32 semantics
        cov_bf16 = sp["cov_sqrt"].astype(jnp.bfloat16).astype(jnp.float32)
        expect_bf16 = sample_ref(sp["mean"], sp["log_std"], cov_bf16, z1, z2)
        expect_f32 = sample_ref(sp["mean"], sp["log_std"], sp["cov_sqrt"], z1, z2)
        assert np.allclose(np.asarray(sample), np.asarray(expect_bf16),
                           atol=1e-5, rtol=1e-5)
        assert np.allclose(np.asarray(sample), np.asarray(expect_f32),
                           atol=5e-3, rtol=5e-3)
        assert sample.shape == sp["mean"].shape
        results[name] = (sample, z1)

    tr_sample, _ = results["tr"]

    # ---- forward(): run the sampled classifier head on an input feature batch --------
    cn = state["classifier_num"]                             # fc.weight + fc.bias (tail of tr)
    fc_w = tr_sample[-cn:-10].reshape(10, 32)
    fc_b = tr_sample[-10:]
    x_feat = jax.random.normal(k_x, (2, 32), jnp.float32)    # batch=2, hidden=32
    logits = linear_head(x_feat, fc_w, fc_b)
    logits_expect = x_feat @ fc_w.T + fc_b[None, :]

    jax.block_until_ready(logits)
    assert np.allclose(np.asarray(logits), np.asarray(logits_expect), atol=1e-4, rtol=1e-4)
    assert logits.shape == (2, 10)

    print("KERNEL_OK")
</pallas_src>

<mosaic_0001>
module attributes {stable_mosaic.version = 11 : i64} {
  func.func @_sabma_sample_kernel_rng(%arg0: i32, %arg1: memref<8xf32, #tpu.memory_space<smem>>, %arg2: memref<1xi32, #tpu.memory_space<smem>>, %arg3: memref<16x128xf32, #tpu.memory_space<vmem>>, %arg4: memref<16x128xf32, #tpu.memory_space<vmem>>, %arg5: memref<1x8x16x128xbf16, #tpu.memory_space<vmem>>, %arg6: memref<16x128xf32, #tpu.memory_space<vmem>>, %arg7: memref<16x128xf32, #tpu.memory_space<vmem>>) attributes {dimension_semantics = [#tpu.dimension_semantics<parallel>], iteration_bounds = array<i64: 1>, scalar_prefetch = 2 : i64, scratch_operands = 0 : i64, tpu.core_type = #tpu.core_type<tc>, window_params = [{transform_indices = @transform_0, window_bounds = array<i64: 16, 128>}, {transform_indices = @transform_1, window_bounds = array<i64: 16, 128>}, {transform_indices = @transform_2, window_bounds = array<i64: 1, 8, 16, 128>}, {transform_indices = @transform_3, window_bounds = array<i64: 16, 128>}, {transform_indices = @transform_4, window_bounds = array<i64: 16, 128>}]} {
    %c0 = arith.constant 0 : index
    %0 = memref.load %arg2[%c0] : memref<1xi32, #tpu.memory_space<smem>>
    %1 = arith.addi %0, %arg0 : i32
    "tpu.prng_set_seed_32"(%1) : (i32) -> ()
    %c0_i32 = arith.constant 0 : i32
    %c0_i32_0 = arith.constant 0 : i32
    %cst = arith.constant -0.99999994 : f32
    %cst_1 = arith.constant 1.000000e+00 : f32
    %2 = vector.broadcast %cst : f32 to vector<1x1xf32>
    %3 = vector.broadcast %cst_1 : f32 to vector<1x1xf32>
    %4 = "tpu.prng_random_bits"() : () -> vector<16x128xi32>
    %c9_i32 = arith.constant 9 : i32
    %5 = vector.broadcast %c9_i32 : i32 to vector<16x128xi32>
    %6 = arith.shrui %4, %5 : vector<16x128xi32>
    %c1065353216_i32 = arith.constant 1065353216 : i32
    %7 = vector.broadcast %c1065353216_i32 : i32 to vector<16x128xi32>
    %8 = arith.ori %6, %7 : vector<16x128xi32>
    %9 = tpu.bitcast %8 : vector<16x128xi32> -> vector<16x128xf32>
    %cst_2 = arith.constant 1.000000e+00 : f32
    %10 = vector.broadcast %cst_2 : f32 to vector<16x128xf32>
    %11 = arith.subf %9, %10 : vector<16x128xf32>
    %12 = arith.subf %3, %2 : vector<1x1xf32>
    %13 = vector.broadcast %12 : vector<1x1xf32> to vector<16x128xf32>
    %14 = arith.mulf %11, %13 : vector<16x128xf32>
    %15 = vector.broadcast %2 : vector<1x1xf32> to vector<16x128xf32>
    %16 = arith.addf %14, %15 : vector<16x128xf32>
    %17 = vector.broadcast %2 : vector<1x1xf32> to vector<16x128xf32>
    %18 = arith.maximumf %17, %16 : vector<16x128xf32>
    %cst_3 = arith.constant 0.000000e+00 : f32
    %19 = vector.broadcast %cst_3 : f32 to vector<16x128xf32>
    %20 = arith.subf %19, %18 : vector<16x128xf32>
    %21 = arith.mulf %18, %20 : vector<16x128xf32>
    %22 = math.log1p %21 : vector<16x128xf32>
    %cst_4 = arith.constant 0.000000e+00 : f32
    %23 = vector.broadcast %cst_4 : f32 to vector<16x128xf32>
    %24 = arith.subf %23, %22 : vector<16x128xf32>
    %cst_5 = arith.constant 5.000000e+00 : f32
    %25 = vector.broadcast %cst_5 : f32 to vector<16x128xf32>
    %26 = arith.cmpf olt, %24, %25 : vector<16x128xf32>
    %cst_6 = arith.constant 2.500000e+00 : f32
    %27 = vector.broadcast %cst_6 : f32 to vector<16x128xf32>
    %28 = arith.subf %24, %27 : vector<16x128xf32>
    %29 = math.sqrt %24 : vector<16x128xf32>
    %cst_7 = arith.constant 3.000000e+00 : f32
    %30 = vector.broadcast %cst_7 : f32 to vector<16x128xf32>
    %31 = arith.subf %29, %30 : vector<16x128xf32>
    %32 = arith.select %26, %28, %31 : vector<16x128xi1>, vector<16x128xf32>
    %cst_8 = arith.constant 2.81022636E-8 : f32
    %cst_9 = arith.constant -2.00214257E-4 : f32
    %33 = vector.broadcast %cst_8 : f32 to vector<16x128xf32>
    %34 = vector.broadcast %cst_9 : f32 to vector<16x128xf32>
    %35 = arith.select %26, %33, %34 : vector<16x128xi1>, vector<16x128xf32>
    %cst_10 = arith.constant 3.43273939E-7 : f32
    %cst_11 = arith.constant 1.00950558E-4 : f32
    %36 = vector.broadcast %cst_10 : f32 to vector<16x128xf32>
    %37 = vector.broadcast %cst_11 : f32 to vector<16x128xf32>
    %38 = arith.select %26, %36, %37 : vector<16x128xi1>, vector<16x128xf32>
    %39 = arith.mulf %35, %32 : vector<16x128xf32>
    %40 = arith.addf %38, %39 : vector<16x128xf32>
    %cst_12 = arith.constant -3.5233877E-6 : f32
    %cst_13 = arith.constant 0.00134934322 : f32
    %41 = vector.broadcast %cst_12 : f32 to vector<16x128xf32>
    %42 = vector.broadcast %cst_13 : f32 to vector<16x128xf32>
    %43 = arith.select %26, %41, %42 : vector<16x128xi1>, vector<16x128xf32>
    %44 = arith.mulf %40, %32 : vector<16x128xf32>
    %45 = arith.addf %43, %44 : vector<16x128xf32>
    %cst_14 = arith.constant -4.39150654E-6 : f32
    %cst_15 = arith.constant -0.00367342844 : f32
    %46 = vector.broadcast %cst_14 : f32 to vector<16x128xf32>
    %47 = vector.broadcast %cst_15 : f32 to vector<16x128xf32>
    %48 = arith.select %26, %46, %47 : vector<16x128xi1>, vector<16x128xf32>
    %49 = arith.mulf %45, %32 : vector<16x128xf32>
    %50 = arith.addf %48, %49 : vector<16x128xf32>
    %cst_16 = arith.constant 2.1858087E-4 : f32
    %cst_17 = arith.constant 0.00573950773 : f32
    %51 = vector.broadcast %cst_16 : f32 to vector<16x128xf32>
    %52 = vector.broadcast %cst_17 : f32 to vector<16x128xf32>
    %53 = arith.select %26, %51, %52 : vector<16x128xi1>, vector<16x128xf32>
    %54 = arith.mulf %50, %32 : vector<16x128xf32>
    %55 = arith.addf %53, %54 : vector<16x128xf32>
    %cst_18 = arith.constant -0.00125372503 : f32
    %cst_19 = arith.constant -0.0076224613 : f32
    %56 = vector.broadcast %cst_18 : f32 to vector<16x128xf32>
    %57 = vector.broadcast %cst_19 : f32 to vector<16x128xf32>
    %58 = arith.select %26, %56, %57 : vector<16x128xi1>, vector<16x128xf32>
    %59 = arith.mulf %55, %32 : vector<16x128xf32>
    %60 = arith.addf %58, %59 : vector<16x128xf32>
    %cst_20 = arith.constant -0.00417768164 : f32
    %cst_21 = arith.constant 0.00943887047 : f32
    %61 = vector.broadcast %cst_20 : f32 to vector<16x128xf32>
    %62 = vector.broadcast %cst_21 : f32 to vector<16x128xf32>
    %63 = arith.select %26, %61, %62 : vector<16x128xi1>, vector<16x128xf32>
    %64 = arith.mulf %60, %32 : vector<16x128xf32>
    %65 = arith.addf %63, %64 : vector<16x128xf32>
    %cst_22 = arith.constant 0.246640727 : f32
    %cst_23 = arith.constant 1.00167406 : f32
    %66 = vector.broadcast %cst_22 : f32 to vector<16x128xf32>
    %67 = vector.broadcast %cst_23 : f32 to vector<16x128xf32>
    %68 = arith.select %26, %66, %67 : vector<16x128xi1>, vector<16x128xf32>
    %69 = arith.mulf %65, %32 : vector<16x128xf32>
    %70 = arith.addf %68, %69 : vector<16x128xf32>
    %cst_24 = arith.constant 1.50140941 : f32
    %cst_25 = arith.constant 2.83297682 : f32
    %71 = vector.broadcast %cst_24 : f32 to vector<16x128xf32>
    %72 = vector.broadcast %cst_25 : f32 to vector<16x128xf32>
    %73 = arith.select %26, %71, %72 : vector<16x128xi1>, vector<16x128xf32>
    %74 = arith.mulf %70, %32 : vector<16x128xf32>
    %75 = arith.addf %73, %74 : vector<16x128xf32>
    %76 = math.absf %18 : vector<16x128xf32>
    %cst_26 = arith.constant 1.000000e+00 : f32
    %77 = vector.broadcast %cst_26 : f32 to vector<16x128xf32>
    %78 = arith.cmpf oeq, %76, %77 : vector<16x128xf32>
    %cst_27 = arith.constant 0x7F800000 : f32
    %79 = vector.broadcast %cst_27 : f32 to vector<16x128xf32>
    %80 = arith.mulf %79, %18 : vector<16x128xf32>
    %81 = arith.mulf %75, %18 : vector<16x128xf32>
    %82 = arith.select %78, %80, %81 : vector<16x128xi1>, vector<16x128xf32>
    %cst_28 = arith.constant 1.41421354 : f32
    %83 = vector.broadcast %cst_28 : f32 to vector<16x128xf32>
    %84 = arith.mulf %83, %82 : vector<16x128xf32>
    %c0_29 = arith.constant 0 : index
    %85 = memref.load %arg1[%c0_29] : memref<8xf32, #tpu.memory_space<smem>>
    %c0_30 = arith.constant 0 : index
    %c0_31 = arith.constant 0 : index
    %c0_32 = arith.constant 0 : index
    %c0_33 = arith.constant 0 : index
    %86 = vector.load %arg5[%c0_30, %c0_31, %c0_32, %c0_33] : memref<1x8x16x128xbf16, #tpu.memory_space<vmem>>, vector<1x1x16x128xbf16>
    %87 = vector.shape_cast %86 : vector<1x1x16x128xbf16> to vector<16x128xbf16>
    %88 = arith.extf %87 : vector<16x128xbf16> to vector<16x128xf32>
    %89 = vector.broadcast %85 : f32 to vector<16x128xf32>
    %90 = arith.mulf %89, %88 : vector<16x128xf32>
    %c1 = arith.constant 1 : index
    %91 = memref.load %arg1[%c1] : memref<8xf32, #tpu.memory_space<smem>>
    %c0_34 = arith.constant 0 : index
    %c1_35 = arith.constant 1 : index
    %c0_36 = arith.constant 0 : index
    %c0_37 = arith.constant 0 : index
    %92 = vector.load %arg5[%c0_34, %c1_35, %c0_36, %c0_37] : memref<1x8x16x128xbf16, #tpu.memory_space<vmem>>, vector<1x1x16x128xbf16>
    %93 = vector.shape_cast %92 : vector<1x1x16x128xbf16> to vector<16x128xbf16>
    %94 = arith.extf %93 : vector<16x128xbf16> to vector<16x128xf32>
    %95 = vector.broadcast %91 : f32 to vector<16x128xf32>
    %96 = arith.mulf %95, %94 : vector<16x128xf32>
    %97 = arith.addf %90, %96 : vector<16x128xf32>
    %c2 = arith.constant 2 : index
    %98 = memref.load %arg1[%c2] : memref<8xf32, #tpu.memory_space<smem>>
    %c0_38 = arith.constant 0 : index
    %c2_39 = arith.constant 2 : index
    %c0_40 = arith.constant 0 : index
    %c0_41 = arith.constant 0 : index
    %99 = vector.load %arg5[%c0_38, %c2_39, %c0_40, %c0_41] : memref<1x8x16x128xbf16, #tpu.memory_space<vmem>>, vector<1x1x16x128xbf16>
    %100 = vector.shape_cast %99 : vector<1x1x16x128xbf16> to vector<16x128xbf16>
    %101 = arith.extf %100 : vector<16x128xbf16> to vector<16x128xf32>
    %102 = vector.broadcast %98 : f32 to vector<16x128xf32>
    %103 = arith.mulf %102, %101 : vector<16x128xf32>
    %104 = arith.addf %97, %103 : vector<16x128xf32>
    %c3 = arith.constant 3 : index
    %105 = memref.load %arg1[%c3] : memref<8xf32, #tpu.memory_space<smem>>
    %c0_42 = arith.constant 0 : index
    %c3_43 = arith.constant 3 : index
    %c0_44 = arith.constant 0 : index
    %c0_45 = arith.constant 0 : index
    %106 = vector.load %arg5[%c0_42, %c3_43, %c0_44, %c0_45] : memref<1x8x16x128xbf16, #tpu.memory_space<vmem>>, vector<1x1x16x128xbf16>
    %107 = vector.shape_cast %106 : vector<1x1x16x128xbf16> to vector<16x128xbf16>
    %108 = arith.extf %107 : vector<16x128xbf16> to vector<16x128xf32>
    %109 = vector.broadcast %105 : f32 to vector<16x128xf32>
    %110 = arith.mulf %109, %108 : vector<16x128xf32>
    %111 = arith.addf %104, %110 : vector<16x128xf32>
    %c4 = arith.constant 4 : index
    %112 = memref.load %arg1[%c4] : memref<8xf32, #tpu.memory_space<smem>>
    %c0_46 = arith.constant 0 : index
    %c4_47 = arith.constant 4 : index
    %c0_48 = arith.constant 0 : index
    %c0_49 = arith.constant 0 : index
    %113 = vector.load %arg5[%c0_46, %c4_47, %c0_48, %c0_49] : memref<1x8x16x128xbf16, #tpu.memory_space<vmem>>, vector<1x1x16x128xbf16>
    %114 = vector.shape_cast %113 : vector<1x1x16x128xbf16> to vector<16x128xbf16>
    %115 = arith.extf %114 : vector<16x128xbf16> to vector<16x128xf32>
    %116 = vector.broadcast %112 : f32 to vector<16x128xf32>
    %117 = arith.mulf %116, %115 : vector<16x128xf32>
    %118 = arith.addf %111, %117 : vector<16x128xf32>
    %c5 = arith.constant 5 : index
    %119 = memref.load %arg1[%c5] : memref<8xf32, #tpu.memory_space<smem>>
    %c0_50 = arith.constant 0 : index
    %c5_51 = arith.constant 5 : index
    %c0_52 = arith.constant 0 : index
    %c0_53 = arith.constant 0 : index
    %120 = vector.load %arg5[%c0_50, %c5_51, %c0_52, %c0_53] : memref<1x8x16x128xbf16, #tpu.memory_space<vmem>>, vector<1x1x16x128xbf16>
    %121 = vector.shape_cast %120 : vector<1x1x16x128xbf16> to vector<16x128xbf16>
    %122 = arith.extf %121 : vector<16x128xbf16> to vector<16x128xf32>
    %123 = vector.broadcast %119 : f32 to vector<16x128xf32>
    %124 = arith.mulf %123, %122 : vector<16x128xf32>
    %125 = arith.addf %118, %124 : vector<16x128xf32>
    %c6 = arith.constant 6 : index
    %126 = memref.load %arg1[%c6] : memref<8xf32, #tpu.memory_space<smem>>
    %c0_54 = arith.constant 0 : index
    %c6_55 = arith.constant 6 : index
    %c0_56 = arith.constant 0 : index
    %c0_57 = arith.constant 0 : index
    %127 = vector.load %arg5[%c0_54, %c6_55, %c0_56, %c0_57] : memref<1x8x16x128xbf16, #tpu.memory_space<vmem>>, vector<1x1x16x128xbf16>
    %128 = vector.shape_cast %127 : vector<1x1x16x128xbf16> to vector<16x128xbf16>
    %129 = arith.extf %128 : vector<16x128xbf16> to vector<16x128xf32>
    %130 = vector.broadcast %126 : f32 to vector<16x128xf32>
    %131 = arith.mulf %130, %129 : vector<16x128xf32>
    %132 = arith.addf %125, %131 : vector<16x128xf32>
    %c7 = arith.constant 7 : index
    %133 = memref.load %arg1[%c7] : memref<8xf32, #tpu.memory_space<smem>>
    %c0_58 = arith.constant 0 : index
    %c7_59 = arith.constant 7 : index
    %c0_60 = arith.constant 0 : index
    %c0_61 = arith.constant 0 : index
    %134 = vector.load %arg5[%c0_58, %c7_59, %c0_60, %c0_61] : memref<1x8x16x128xbf16, #tpu.memory_space<vmem>>, vector<1x1x16x128xbf16>
    %135 = vector.shape_cast %134 : vector<1x1x16x128xbf16> to vector<16x128xbf16>
    %136 = arith.extf %135 : vector<16x128xbf16> to vector<16x128xf32>
    %137 = vector.broadcast %133 : f32 to vector<16x128xf32>
    %138 = arith.mulf %137, %136 : vector<16x128xf32>
    %139 = arith.addf %132, %138 : vector<16x128xf32>
    %c0_62 = arith.constant 0 : index
    %c0_63 = arith.constant 0 : index
    %140 = vector.load %arg7[%c0_62, %c0_63] : memref<16x128xf32, #tpu.memory_space<vmem>>, vector<16x128xf32>
    tpu.vector_store %arg7[%c0_62, %c0_63], %84 {strides = array<i32>} : memref<16x128xf32, #tpu.memory_space<vmem>>, vector<16x128xf32>,
    %c0_64 = arith.constant 0 : index
    %c0_65 = arith.constant 0 : index
    %141 = vector.load %arg3[%c0_64, %c0_65] : memref<16x128xf32, #tpu.memory_space<vmem>>, vector<16x128xf32>
    %c0_66 = arith.constant 0 : index
    %c0_67 = arith.constant 0 : index
    %142 = vector.load %arg4[%c0_66, %c0_67] : memref<16x128xf32, #tpu.memory_space<vmem>>, vector<16x128xf32>
    %143 = arith.mulf %142, %84 : vector<16x128xf32>
    %144 = arith.addf %141, %143 : vector<16x128xf32>
    %145 = arith.addf %144, %139 : vector<16x128xf32>
    %c0_68 = arith.constant 0 : index
    %c0_69 = arith.constant 0 : index
    %146 = vector.load %arg6[%c0_68, %c0_69] : memref<16x128xf32, #tpu.memory_space<vmem>>, vector<16x128xf32>
    tpu.vector_store %arg6[%c0_68, %c0_69], %145 {strides = array<i32>} : memref<16x128xf32, #tpu.memory_space<vmem>>, vector<16x128xf32>,
    return
  }
  func.func @transform_0(%arg0: i32, %arg1: memref<8xf32, #tpu.memory_space<smem>>, %arg2: memref<1xi32, #tpu.memory_space<smem>>) -> (i32, i32) {
    %c0_i32 = arith.constant 0 : i32
    %c0_i32_0 = arith.constant 0 : i32
    return %arg0, %c0_i32 : i32, i32
  }
  func.func @transform_1(%arg0: i32, %arg1: memref<8xf32, #tpu.memory_space<smem>>, %arg2: memref<1xi32, #tpu.memory_space<smem>>) -> (i32, i32) {
    %c0_i32 = arith.constant 0 : i32
    %c0_i32_0 = arith.constant 0 : i32
    return %arg0, %c0_i32 : i32, i32
  }
  func.func @transform_2(%arg0: i32, %arg1: memref<8xf32, #tpu.memory_space<smem>>, %arg2: memref<1xi32, #tpu.memory_space<smem>>) -> (i32, i32, i32, i32) {
    %c0_i32 = arith.constant 0 : i32
    %c0_i32_0 = arith.constant 0 : i32
    %c0_i32_1 = arith.constant 0 : i32
    %c0_i32_2 = arith.constant 0 : i32
    return %arg0, %c0_i32, %c0_i32_0, %c0_i32_1 : i32, i32, i32, i32
  }
  func.func @transform_3(%arg0: i32, %arg1: memref<8xf32, #tpu.memory_space<smem>>, %arg2: memref<1xi32, #tpu.memory_space<smem>>) -> (i32, i32) {
    %c0_i32 = arith.constant 0 : i32
    %c0_i32_0 = arith.constant 0 : i32
    return %arg0, %c0_i32 : i32, i32
  }
  func.func @transform_4(%arg0: i32, %arg1: memref<8xf32, #tpu.memory_space<smem>>, %arg2: memref<1xi32, #tpu.memory_space<smem>>) -> (i32, i32) {
    %c0_i32 = arith.constant 0 : i32
    %c0_i32_0 = arith.constant 0 : i32
    return %arg0, %c0_i32 : i32, i32
  }
}

module attributes {stable_mosaic.version = 11 : i64} {
  func.func @_sabma_sample_kernel_hostz1(%arg0: i32, %arg1: memref<8xf32, #tpu.memory_space<smem>>, %arg2: memref<16x128xf32, #tpu.memory_space<vmem>>, %arg3: memref<16x128xf32, #tpu.memory_space<vmem>>, %arg4: memref<1x8x16x128xbf16, #tpu.memory_space<vmem>>, %arg5: memref<16x128xf32, #tpu.memory_space<vmem>>, %arg6: memref<16x128xf32, #tpu.memory_space<vmem>>) attributes {dimension_semantics = [#tpu.dimension_semantics<parallel>], iteration_bounds = array<i64: 1>, scalar_prefetch = 1 : i64, scratch_operands = 0 : i64, tpu.core_type = #tpu.core_type<tc>, window_params = [{transform_indices = @transform_0, window_bounds = array<i64: 16, 128>}, {transform_indices = @transform_1, window_bounds = array<i64: 16, 128>}, {transform_indices = @transform_2, window_bounds = array<i64: 1, 8, 16, 128>}, {transform_indices = @transform_3, window_bounds = array<i64: 16, 128>}, {transform_indices = @transform_4, window_bounds = array<i64: 16, 128>}]} {
    %c0 = arith.constant 0 : index
    %0 = memref.load %arg1[%c0] : memref<8xf32, #tpu.memory_space<smem>>
    %c0_0 = arith.constant 0 : index
    %c0_1 = arith.constant 0 : index
    %c0_2 = arith.constant 0 : index
    %c0_3 = arith.constant 0 : index
    %1 = vector.load %arg4[%c0_0, %c0_1, %c0_2, %c0_3] : memref<1x8x16x128xbf16, #tpu.memory_space<vmem>>, vector<1x1x16x128xbf16>
    %2 = vector.shape_cast %1 : vector<1x1x16x128xbf16> to vector<16x128xbf16>
    %3 = arith.extf %2 : vector<16x128xbf16> to vector<16x128xf32>
    %4 = vector.broadcast %0 : f32 to vector<16x128xf32>
    %5 = arith.mulf %4, %3 : vector<16x128xf32>
    %c1 = arith.constant 1 : index
    %6 = memref.load %arg1[%c1] : memref<8xf32, #tpu.memory_space<smem>>
    %c0_4 = arith.constant 0 : index
    %c1_5 = arith.constant 1 : index
    %c0_6 = arith.constant 0 : index
    %c0_7 = arith.constant 0 : index
    %7 = vector.load %arg4[%c0_4, %c1_5, %c0_6, %c0_7] : memref<1x8x16x128xbf16, #tpu.memory_space<vmem>>, vector<1x1x16x128xbf16>
    %8 = vector.shape_cast %7 : vector<1x1x16x128xbf16> to vector<16x128xbf16>
    %9 = arith.extf %8 : vector<16x128xbf16> to vector<16x128xf32>
    %10 = vector.broadcast %6 : f32 to vector<16x128xf32>
    %11 = arith.mulf %10, %9 : vector<16x128xf32>
    %12 = arith.addf %5, %11 : vector<16x128xf32>
    %c2 = arith.constant 2 : index
    %13 = memref.load %arg1[%c2] : memref<8xf32, #tpu.memory_space<smem>>
    %c0_8 = arith.constant 0 : index
    %c2_9 = arith.constant 2 : index
    %c0_10 = arith.constant 0 : index
    %c0_11 = arith.constant 0 : index
    %14 = vector.load %arg4[%c0_8, %c2_9, %c0_10, %c0_11] : memref<1x8x16x128xbf16, #tpu.memory_space<vmem>>, vector<1x1x16x128xbf16>
    %15 = vector.shape_cast %14 : vector<1x1x16x128xbf16> to vector<16x128xbf16>
    %16 = arith.extf %15 : vector<16x128xbf16> to vector<16x128xf32>
    %17 = vector.broadcast %13 : f32 to vector<16x128xf32>
    %18 = arith.mulf %17, %16 : vector<16x128xf32>
    %19 = arith.addf %12, %18 : vector<16x128xf32>
    %c3 = arith.constant 3 : index
    %20 = memref.load %arg1[%c3] : memref<8xf32, #tpu.memory_space<smem>>
    %c0_12 = arith.constant 0 : index
    %c3_13 = arith.constant 3 : index
    %c0_14 = arith.constant 0 : index
    %c0_15 = arith.constant 0 : index
    %21 = vector.load %arg4[%c0_12, %c3_13, %c0_14, %c0_15] : memref<1x8x16x128xbf16, #tpu.memory_space<vmem>>, vector<1x1x16x128xbf16>
    %22 = vector.shape_cast %21 : vector<1x1x16x128xbf16> to vector<16x128xbf16>
    %23 = arith.extf %22 : vector<16x128xbf16> to vector<16x128xf32>
    %24 = vector.broadcast %20 : f32 to vector<16x128xf32>
    %25 = arith.mulf %24, %23 : vector<16x128xf32>
    %26 = arith.addf %19, %25 : vector<16x128xf32>
    %c4 = arith.constant 4 : index
    %27 = memref.load %arg1[%c4] : memref<8xf32, #tpu.memory_space<smem>>
    %c0_16 = arith.constant 0 : index
    %c4_17 = arith.constant 4 : index
    %c0_18 = arith.constant 0 : index
    %c0_19 = arith.constant 0 : index
    %28 = vector.load %arg4[%c0_16, %c4_17, %c0_18, %c0_19] : memref<1x8x16x128xbf16, #tpu.memory_space<vmem>>, vector<1x1x16x128xbf16>
    %29 = vector.shape_cast %28 : vector<1x1x16x128xbf16> to vector<16x128xbf16>
    %30 = arith.extf %29 : vector<16x128xbf16> to vector<16x128xf32>
    %31 = vector.broadcast %27 : f32 to vector<16x128xf32>
    %32 = arith.mulf %31, %30 : vector<16x128xf32>
    %33 = arith.addf %26, %32 : vector<16x128xf32>
    %c5 = arith.constant 5 : index
    %34 = memref.load %arg1[%c5] : memref<8xf32, #tpu.memory_space<smem>>
    %c0_20 = arith.constant 0 : index
    %c5_21 = arith.constant 5 : index
    %c0_22 = arith.constant 0 : index
    %c0_23 = arith.constant 0 : index
    %35 = vector.load %arg4[%c0_20, %c5_21, %c0_22, %c0_23] : memref<1x8x16x128xbf16, #tpu.memory_space<vmem>>, vector<1x1x16x128xbf16>
    %36 = vector.shape_cast %35 : vector<1x1x16x128xbf16> to vector<16x128xbf16>
    %37 = arith.extf %36 : vector<16x128xbf16> to vector<16x128xf32>
    %38 = vector.broadcast %34 : f32 to vector<16x128xf32>
    %39 = arith.mulf %38, %37 : vector<16x128xf32>
    %40 = arith.addf %33, %39 : vector<16x128xf32>
    %c6 = arith.constant 6 : index
    %41 = memref.load %arg1[%c6] : memref<8xf32, #tpu.memory_space<smem>>
    %c0_24 = arith.constant 0 : index
    %c6_25 = arith.constant 6 : index
    %c0_26 = arith.constant 0 : index
    %c0_27 = arith.constant 0 : index
    %42 = vector.load %arg4[%c0_24, %c6_25, %c0_26, %c0_27] : memref<1x8x16x128xbf16, #tpu.memory_space<vmem>>, vector<1x1x16x128xbf16>
    %43 = vector.shape_cast %42 : vector<1x1x16x128xbf16> to vector<16x128xbf16>
    %44 = arith.extf %43 : vector<16x128xbf16> to vector<16x128xf32>
    %45 = vector.broadcast %41 : f32 to vector<16x128xf32>
    %46 = arith.mulf %45, %44 : vector<16x128xf32>
    %47 = arith.addf %40, %46 : vector<16x128xf32>
    %c7 = arith.constant 7 : index
    %48 = memref.load %arg1[%c7] : memref<8xf32, #tpu.memory_space<smem>>
    %c0_28 = arith.constant 0 : index
    %c7_29 = arith.constant 7 : index
    %c0_30 = arith.constant 0 : index
    %c0_31 = arith.constant 0 : index
    %49 = vector.load %arg4[%c0_28, %c7_29, %c0_30, %c0_31] : memref<1x8x16x128xbf16, #tpu.memory_space<vmem>>, vector<1x1x16x128xbf16>
    %50 = vector.shape_cast %49 : vector<1x1x16x128xbf16> to vector<16x128xbf16>
    %51 = arith.extf %50 : vector<16x128xbf16> to vector<16x128xf32>
    %52 = vector.broadcast %48 : f32 to vector<16x128xf32>
    %53 = arith.mulf %52, %51 : vector<16x128xf32>
    %54 = arith.addf %47, %53 : vector<16x128xf32>
    %c0_32 = arith.constant 0 : index
    %c0_33 = arith.constant 0 : index
    %55 = vector.load %arg2[%c0_32, %c0_33] : memref<16x128xf32, #tpu.memory_space<vmem>>, vector<16x128xf32>
    %c0_34 = arith.constant 0 : index
    %c0_35 = arith.constant 0 : index
    %56 = vector.load %arg3[%c0_34, %c0_35] : memref<16x128xf32, #tpu.memory_space<vmem>>, vector<16x128xf32>
    %c0_36 = arith.constant 0 : index
    %c0_37 = arith.constant 0 : index
    %57 = vector.load %arg5[%c0_36, %c0_37] : memref<16x128xf32, #tpu.memory_space<vmem>>, vector<16x128xf32>
    %58 = arith.mulf %56, %57 : vector<16x128xf32>
    %59 = arith.addf %55, %58 : vector<16x128xf32>
    %60 = arith.addf %59, %54 : vector<16x128xf32>
    %c0_38 = arith.constant 0 : index
    %c0_39 = arith.constant 0 : index
    %61 = vector.load %arg6[%c0_38, %c0_39] : memref<16x128xf32, #tpu.memory_space<vmem>>, vector<16x128xf32>
    tpu.vector_store %arg6[%c0_38, %c0_39], %60 {strides = array<i32>} : memref<16x128xf32, #tpu.memory_space<vmem>>, vector<16x128xf32>,
    return
  }
  func.func @transform_0(%arg0: i32, %arg1: memref<8xf32, #tpu.memory_space<smem>>) -> (i32, i32) {
    %c0_i32 = arith.constant 0 : i32
    %c0_i32_0 = arith.constant 0 : i32
    return %arg0, %c0_i32 : i32, i32
  }
  func.func @transform_1(%arg0: i32, %arg1: memref<8xf32, #tpu.memory_space<smem>>) -> (i32, i32) {
    %c0_i32 = arith.constant 0 : i32
    %c0_i32_0 = arith.constant 0 : i32
    return %arg0, %c0_i32 : i32, i32
  }
  func.func @transform_2(%arg0: i32, %arg1: memref<8xf32, #tpu.memory_space<smem>>) -> (i32, i32, i32, i32) {
    %c0_i32 = arith.constant 0 : i32
    %c0_i32_0 = arith.constant 0 : i32
    %c0_i32_1 = arith.constant 0 : i32
    %c0_i32_2 = arith.constant 0 : i32
    return %arg0, %c0_i32, %c0_i32_0, %c0_i32_1 : i32, i32, i32, i32
  }
  func.func @transform_3(%arg0: i32, %arg1: memref<8xf32, #tpu.memory_space<smem>>) -> (i32, i32) {
    %c0_i32 = arith.constant 0 : i32
    %c0_i32_0 = arith.constant 0 : i32
    return %arg0, %c0_i32 : i32, i32
  }
  func.func @transform_4(%arg0: i32, %arg1: memref<8xf32, #tpu.memory_space<smem>>) -> (i32, i32) {
    %c0_i32 = arith.constant 0 : i32
    %c0_i32_0 = arith.constant 0 : i32
    return %arg0, %c0_i32 : i32, i32
  }
}

</mosaic_0001>

<bundles_post_ra>
// kernel: tpu_custom_call.1
= control target key start
LH: loop header
LB: loop body
LE: loop exit
PB: predicated region body
PF: predicated region fallthrough
CT: control target
= control target key end

     0   :  { %s865_s0 = inlined_call_operand.vmem [shape: f32[8], index: 0, kind: input, shape index: {}]   ;;  %s866_s1 = inlined_call_operand.<no memory space> [shape: s32[1], index: 1, kind: input, shape index: {}]   ;;  %s867_s2 = inlined_call_operand.hbm [shape: f32[16,128], index: 2, kind: input, shape index: {}]   ;;  %s868_s3 = inlined_call_operand.hbm [shape: f32[16,128], index: 3, kind: input, shape index: {}]   ;;  %s869_s4 = inlined_call_operand.hbm [shape: bf16[1,8,16,128], index: 4, kind: input, shape index: {}]   ;;  %s870_s5 = inlined_call_operand.hbm [shape: f32[16,128], index: 5, kind: output, shape index: {0}]   ;;  %s871_s6 = inlined_call_operand.hbm [shape: f32[16,128], index: 6, kind: output, shape index: {1}]  }
   0x1   :  { %s12_s23 = sshll.u32 %s865_s0, 4  ;;  %s13_s23 = int_to_ptr.vmem [resolvable:$true] %s12_s23 }
   0x2   :  { %s521_s24 = scalar_lea.vmem %s13_s23, 16  ;;  %p526_p1 = scmp.lt.s32.totalorder %s13_s23, %s13_s23 }
   0x3   :  { %p522_p0 = scmp.ne.s32.totalorder %s13_s23, %s521_s24  ;;  %p527_p2 = scmp.lt.s32.totalorder %s521_s24, %s521_s24 }
   0x5   :  { %p528_p3 = por %p527_p2, %p526_p1 }
   0x7   :  { %p529_p4 = pnand %p528_p3, %p522_p0 }
   0x9   :  { %532 = shalt.err (!%p529_p4)  }
   0xa   :  { %s643_s25 = smov [#allocation3]  }
   0xb   :  { %15 = dma.vmem_to_smem %s13_s23, 16, %s643_s25, [#allocation2] }
   0xc   :  { %633 = dma.done.wait [#allocation2], 16 }
   0xd   :  { %634 = vsyncadd [#allocation2], 4294967280 }
   0xe   :  { %18 = sfence }
   0xf   :  { %19 = vsyncpa [#allocation6], 0 }
  0x10   :  { %20 = vsyncpa [#allocation9], 0 }
  0x11   :  { %21 = vsyncpa [#allocation7], 0 }
  0x12   :  { %22 = vsyncpa [#allocation13], 0  ;;  %s644_s26 = smov [#allocation8]   ;;  %s645_s0 = smov [#allocation5]  }
  0x13   :  { %s40_s27 = sshll.u32 %s644_s26, 4  ;;  %s28_s28 = sshll.u32 %s645_s0, 4  ;;  %s41_s27 = int_to_ptr.vmem [resolvable:$true] %s40_s27  ;;  %s29_s28 = int_to_ptr.vmem [resolvable:$true] %s28_s28 }
  0x14   :  { %s541_s29 = scalar_lea.vmem %s41_s27, 256  ;;  %p546_p6 = scmp.lt.s32.totalorder %s41_s27, %s41_s27 }
  0x15   :  { %p542_p5 = scmp.ne.s32.totalorder %s41_s27, %s541_s29  ;;  %p547_p7 = scmp.lt.s32.totalorder %s541_s29, %s541_s29 }
  0x17   :  { %p548_p8 = por %p547_p7, %p546_p6 }
  0x19   :  { %p549_p9 = pnand %p548_p8, %p542_p5 }
  0x1b   :  { %552 = shalt.err (!%p549_p9)
}
  0x1c   :  { %s646_s30 = smov 128   ;;  %s647_s7 = smov 8  }
  0x1d   :  { %46 = dma.hbm_to_vmem [thread:$0]  %s868_s3, 256, %s41_s27, [#allocation9], %s646_s30, %s646_s30, %s647_s7  }
  0x1e   :  { %s561_s10 = scalar_lea.vmem %s29_s28, 256  ;;  %p566_p11 = scmp.lt.s32.totalorder %s29_s28, %s29_s28 }
  0x1f   :  { %p562_p10 = scmp.ne.s32.totalorder %s29_s28, %s561_s10  ;;  %p567_p12 = scmp.lt.s32.totalorder %s561_s10, %s561_s10 }
  0x21   :  { %p568_p13 = por %p567_p12, %p566_p11 }
  0x23   :  { %p569_p0 = pnand %p568_p13, %p562_p10 }
  0x25   :  { %572 = shalt.err (!%p569_p0)
}
  0x26   :  { %34 = dma.hbm_to_vmem [thread:$0]  %s867_s2, 256, %s29_s28, [#allocation6], %s646_s30, %s646_s30, %s647_s7  }
  0x27   :  { %s648_s13 = smov [#allocation10]  }
  0x28   :  { %s52_s14 = sshll.u32 %s648_s13, 4  ;;  %s53_s14 = int_to_ptr.vmem [resolvable:$true] %s52_s14 }
  0x29   :  { %s581_s15 = scalar_lea.vmem %s53_s14, 1024  ;;  %p586_p2 = scmp.lt.s32.totalorder %s53_s14, %s53_s14 }
  0x2a   :  { %p582_p1 = scmp.ne.s32.totalorder %s53_s14, %s581_s15  ;;  %p587_p3 = scmp.lt.s32.totalorder %s581_s15, %s581_s15 }
  0x2c   :  { %p588_p4 = por %p587_p3, %p586_p2 }
  0x2e   :  { %p589_p5 = pnand %p588_p4, %p582_p1 }
  0x30   :  { %592 = shalt.err (!%p589_p5)
}
  0x31   :  { %s649_s3 = smov 64   ;;  %s650_s16 = smov 4  }
  0x32   :  { %58 = dma.hbm_to_vmem [thread:$0]  %s869_s4, 1024, %s53_s14, [#allocation9], %s649_s3, %s649_s3, %s650_s16  }
  0x33   :  { %635 = dma.done.wait [#allocation6], 256  }
  0x34   :  { %636 = vsyncadd [#allocation6], 4294967040  ;;  %v70_v0 = vlaneseq  ;;  %v718_v1 = vstv %s866_s1 }
  0x35   :  { %637 = dma.done.wait [#allocation9], 1280  }
  0x36   :  { %638 = vsyncadd [#allocation9], 4294966016  ;;  %v74_v2 = vadd.s32 %v718_v1, %v70_v0  ;;  %v72_v17 = vxor.u32 %v718_v1, %v718_v1  ;;  %s761_s1 = sld [smem:[#allocation3]]  ;;  %s660_s26 = smov [#allocation12]  }
  0x37   :  { %s764_s4 = sld [smem:[#allocation3 + $0x1]]  ;;  %s432_s27 = sshll.u32 %s660_s26, 4  ;;  %s433_s27 = int_to_ptr.vmem [resolvable:$true] %s432_s27 }
  0x38   :  { %v75_v3 = vadd.s32 %v74_v2, %v74_v2  ;;  %v76_v4 = vshll.u32 %v74_v2, 13  ;;  %v77_v5 = vshrl.u32 %v74_v2, 19  ;;  %v723_v22 = vxor.u32 466688986, %v72_v17  ;;  %s783_s20 = sld [smem:[#allocation3 + $0x2]]  ;;  %s661_s0 = smov [#allocation11]  }
  0x39   :  { %s793_s21 = sld [smem:[#allocation3 + $0x3]]  ;;  %s420_s28 = sshll.u32 %s661_s0, 4  ;;  %s421_s28 = int_to_ptr.vmem [resolvable:$true] %s420_s28 }
  0x3a   :  { %v78_v6 = vor.u32 %v77_v5, %v76_v4  ;;  %s802_s22 = sld [smem:[#allocation3 + $0x4]]  ;;  %s593_s29 = scalar_lea.vmem %s433_s27, 256 }
  0x3b   :  { %s811_s23 = sld [smem:[#allocation3 + $0x5]]  ;;  %p594_p6 = scmp.ne.s32.totalorder %s433_s27, %s593_s29 }
  0x3c   :  { %v79_v7 = vxor.u32 %v78_v6, %v75_v3  ;;  %s820_s24 = sld [smem:[#allocation3 + $0x6]]  ;;  %p598_p7 = scmp.lt.s32.totalorder %s433_s27, %s433_s27 }
  0x3d   :  { %s829_s25 = sld [smem:[#allocation3 + $0x7]]  ;;  %p599_p8 = scmp.lt.s32.totalorder %s593_s29, %s593_s29 }
  0x3e   :  { %v80_v8 = vadd.s32 %v79_v7, %v75_v3  ;;  %v81_v9 = vshll.u32 %v79_v7, 15  ;;  %v82_v10 = vshrl.u32 %v79_v7, 17 }
  0x3f   :  { %p600_p9 = por %p599_p8, %p598_p7 }
  0x40   :  { %v83_v11 = vor.u32 %v82_v10, %v81_v9 }
  0x41   :  { %p601_p10 = pnand %p600_p9, %p594_p6 }
  0x42   :  { %v84_v12 = vxor.u32 %v83_v11, %v80_v8 }
  0x44   :  { %v85_v13 = vadd.s32 %v84_v12, %v80_v8  ;;  %v86_v14 = vshll.u32 %v84_v12, 26  ;;  %v87_v15 = vshrl.u32 %v84_v12, 6 }
  0x46   :  { %v88_v16 = vor.u32 %v87_v15, %v86_v14 }
  0x48   :  { %v89_v18 = vxor.u32 %v88_v16, %v85_v13 }
  0x4a   :  { %v90_v19 = vadd.s32 %v89_v18, %v85_v13  ;;  %v91_v20 = vshll.u32 %v89_v18, 6  ;;  %v92_v21 = vshrl.u32 %v89_v18, 26 }
  0x4c   :  { %v93_v23 = vor.u32 %v92_v21, %v91_v20  ;;  %v95_v25 = vadd.s32 %v90_v19, %v718_v1 }
  0x4e   :  { %v94_v24 = vxor.u32 %v93_v23, %v90_v19 }
  0x50   :  { %v96_v26 = vadd.s32 %v94_v24, %v723_v22 }
  0x52   :  { %v97_v27 = vadd.s32 1, %v96_v26 }
  0x54   :  { %v98_v28 = vadd.s32 %v97_v27, %v95_v25  ;;  %v99_v29 = vshll.u32 %v97_v27, 17  ;;  %v100_v30 = vshrl.u32 %v97_v27, 15 }
  0x56   :  { %v101_v31 = vor.u32 %v100_v30, %v99_v29 }
  0x58   :  { %v102_v32 = vxor.u32 %v101_v31, %v98_v28 }
  0x5a   :  { %v103_v33 = vadd.s32 %v102_v32, %v98_v28  ;;  %v104_v34 = vshll.u32 %v102_v32, 29  ;;  %v105_v35 = vshrl.u32 %v102_v32, 3 }
  0x5c   :  { %v106_v36 = vor.u32 %v105_v35, %v104_v34 }
  0x5e   :  { %v107_v37 = vxor.u32 %v106_v36, %v103_v33 }
  0x60   :  { %v108_v38 = vadd.s32 %v107_v37, %v103_v33  ;;  %v109_v39 = vshll.u32 %v107_v37, 16  ;;  %v110_v40 = vshrl.u32 %v107_v37, 16 }
  0x62   :  { %v111_v41 = vor.u32 %v110_v40, %v109_v39 }
  0x64   :  { %v112_v42 = vxor.u32 %v111_v41, %v108_v38 }
  0x66   :  { %v113_v43 = vadd.s32 %v112_v42, %v108_v38  ;;  %v114_v44 = vshll.u32 %v112_v42, 24  ;;  %v115_v45 = vshrl.u32 %v112_v42, 8 }
  0x68   :  { %v116_v46 = vor.u32 %v115_v45, %v114_v44  ;;  %v118_v48 = vadd.s32 %v113_v43, %v723_v22 }
  0x6a   :  { %v117_v47 = vxor.u32 %v116_v46, %v113_v43 }
  0x6c   :  { %v119_v49 = vadd.s32 %v117_v47, %v718_v1 }
  0x6e   :  { %v120_v50 = vadd.s32 2, %v119_v49 }
  0x70   :  { %v121_v51 = vadd.s32 %v120_v50, %v118_v48  ;;  %v122_v52 = vshll.u32 %v120_v50, 13  ;;  %v123_v53 = vshrl.u32 %v120_v50, 19 }
  0x72   :  { %v124_v54 = vor.u32 %v123_v53, %v122_v52 }
  0x74   :  { %v125_v55 = vxor.u32 %v124_v54, %v121_v51 }
  0x76   :  { %v126_v56 = vadd.s32 %v125_v55, %v121_v51  ;;  %v127_v57 = vshll.u32 %v125_v55, 15  ;;  %v128_v58 = vshrl.u32 %v125_v55, 17 }
  0x78   :  { %v129_v59 = vor.u32 %v128_v58, %v127_v57 }
  0x7a   :  { %v130_v60 = vxor.u32 %v129_v59, %v126_v56 }
  0x7c   :  { %v131_v61 = vadd.s32 %v130_v60, %v126_v56  ;;  %v132_v62 = vshll.u32 %v130_v60, 26  ;;  %v133_v63 = vshrl.u32 %v130_v60, 6 }
  0x7e   :  { %v134_v0 = vor.u32 %v133_v63, %v132_v62 }
  0x80   :  { %v135_v2 = vxor.u32 %v134_v0, %v131_v61 }
  0x82   :  { %v136_v3 = vadd.s32 %v135_v2, %v131_v61  ;;  %v137_v4 = vshll.u32 %v135_v2, 6  ;;  %v138_v5 = vshrl.u32 %v135_v2, 26 }
  0x84   :  { %v139_v6 = vor.u32 %v138_v5, %v137_v4  ;;  %v141_v8 = vadd.s32 %v136_v3, %v718_v1 }
  0x86   :  { %v140_v7 = vxor.u32 %v139_v6, %v136_v3 }
  0x88   :  { %v142_v9 = vadd.s32 %v140_v7, %v718_v1 }
  0x8a   :  { %v143_v10 = vadd.s32 3, %v142_v9 }
  0x8c   :  { %v144_v11 = vadd.s32 %v143_v10, %v141_v8  ;;  %v145_v12 = vshll.u32 %v143_v10, 17  ;;  %v146_v13 = vshrl.u32 %v143_v10, 15 }
  0x8e   :  { %v147_v14 = vor.u32 %v146_v13, %v145_v12 }
  0x90   :  { %v148_v15 = vxor.u32 %v147_v14, %v144_v11 }
  0x92   :  { %v149_v16 = vadd.s32 %v148_v15, %v144_v11  ;;  %v150_v17 = vshll.u32 %v148_v15, 29  ;;  %v151_v18 = vshrl.u32 %v148_v15, 3 }
  0x94   :  { %v152_v19 = vor.u32 %v151_v18, %v150_v17 }
  0x96   :  { %v153_v20 = vxor.u32 %v152_v19, %v149_v16 }
  0x98   :  { %v154_v21 = vadd.s32 %v153_v20, %v149_v16  ;;  %v155_v23 = vshll.u32 %v153_v20, 16  ;;  %v156_v24 = vshrl.u32 %v153_v20, 16 }
  0x9a   :  { %v157_v25 = vor.u32 %v156_v24, %v155_v23 }
  0x9c   :  { %v158_v26 = vxor.u32 %v157_v25, %v154_v21 }
  0x9e   :  { %v159_v27 = vadd.s32 %v158_v26, %v154_v21  ;;  %v160_v28 = vshll.u32 %v158_v26, 24  ;;  %v161_v29 = vshrl.u32 %v158_v26, 8 }
  0xa0   :  { %v162_v30 = vor.u32 %v161_v29, %v160_v28  ;;  %v164_v32 = vadd.s32 %v159_v27, %v718_v1 }
  0xa2   :  { %v163_v31 = vxor.u32 %v162_v30, %v159_v27 }
  0xa4   :  { %v165_v33 = vadd.s32 %v163_v31, %v723_v22 }
  0xa6   :  { %v166_v34 = vadd.s32 4, %v165_v33 }
  0xa8   :  { %v167_v35 = vadd.s32 %v166_v34, %v164_v32  ;;  %v168_v36 = vshll.u32 %v166_v34, 13  ;;  %v169_v37 = vshrl.u32 %v166_v34, 19 }
  0xaa   :  { %v170_v38 = vor.u32 %v169_v37, %v168_v36 }
  0xac   :  { %v171_v39 = vxor.u32 %v170_v38, %v167_v35 }
  0xae   :  { %v172_v40 = vadd.s32 %v171_v39, %v167_v35  ;;  %v173_v41 = vshll.u32 %v171_v39, 15  ;;  %v174_v42 = vshrl.u32 %v171_v39, 17 }
  0xb0   :  { %v175_v43 = vor.u32 %v174_v42, %v173_v41 }
  0xb2   :  { %v176_v44 = vxor.u32 %v175_v43, %v172_v40 }
  0xb4   :  { %v177_v45 = vadd.s32 %v176_v44, %v172_v40  ;;  %v178_v46 = vshll.u32 %v176_v44, 26  ;;  %v179_v47 = vshrl.u32 %v176_v44, 6  ;;  %v651_v44 = vmov -0.00020021426  }
  0xb6   :  { %v180_v48 = vor.u32 %v179_v47, %v178_v46 }
  0xb8   :  { %v181_v49 = vxor.u32 %v180_v48, %v177_v45 }
  0xba   :  { %v182_v50 = vadd.s32 %v181_v49, %v177_v45  ;;  %v183_v51 = vshll.u32 %v181_v49, 6  ;;  %v184_v52 = vshrl.u32 %v181_v49, 26  ;;  %v652_v49 = vmov 0.00010095056  }
  0xbc   :  { %v185_v53 = vor.u32 %v184_v52, %v183_v51  ;;  %v187_v55 = vadd.s32 %v182_v50, %v723_v22 }
  0xbe   :  { %v186_v54 = vxor.u32 %v185_v53, %v182_v50 }
  0xc0   :  { %v188_v56 = vadd.s32 %v186_v54, %v718_v1 }
  0xc2   :  { %v189_v57 = vadd.s32 5, %v188_v56  ;;  %v467_v56 = vld [vmem:[#allocation10 + $0x8] sm:$0xff]  }
  0xc4   :  { %v190_v58 = vxor.u32 %v189_v57, %v187_v55  ;;  %v463_v55 = vld [vmem:[#allocation10] sm:$0xff]  }
  0xc6   :  { %191 = set.rngseed %v190_v58 }
  0xc7   :  { %v192_v59 = vrng }
  0xc8   :  { %v194_v60 = vshrl.u32 %v192_v59, 9  ;;  %v193_v61 = vrng }
  0xc9   :  { %v195_v62 = vshrl.u32 %v193_v61, 9 }
  0xca   :  { %v196_v63 = vor.u32 1065353216, %v194_v60  ;;  %v653_v60 = vmov 0.0013493432  }
  0xcb   :  { %v197_v0 = vor.u32 1065353216, %v195_v62  ;;  %v464_v62 = vunpack.c.l.bf16 %v463_v55 }
  0xcc   :  { %v449_v2 = vadd.f32 -1.0, %v196_v63  ;;  %v468_v63 = vunpack.c.l.bf16 %v467_v56 }
  0xcd   :  { %v450_v3 = vadd.f32 -1.0, %v197_v0 }
  0xce   :  { %v202_v4 = vmul.f32 2.0, %v449_v2 }
  0xcf   :  { %v203_v5 = vmul.f32 2.0, %v450_v3  ;;  %v321_v3 = vstv %s761_s1 }
  0xd0   :  { %v204_v6 = vadd.f32 -0.99999994, %v202_v4  ;;  %v330_v4 = vstv %s764_s4 }
  0xd1   :  { %v205_v7 = vadd.f32 -0.99999994, %v203_v5  ;;  %v471_v5 = vld [vmem:[#allocation10 + $0x10] sm:$0xff]  }
  0xd2   :  { %v735_v8 = vmax.f32 %v204_v6, -0.99999994 }
  0xd3   :  { %v737_v22 = vmax.f32 %v205_v7, -0.99999994  ;;  %v465_v7 = vunpack.c.h.bf16 %v463_v55 }
  0xd4   :  { %v208_v1 = vsub.f32 0.0, %v735_v8 }
  0xd5   :  { %v209_v9 = vsub.f32 0.0, %v737_v22 }
  0xd6   :  { %v210_v10 = vmul.f32 %v208_v1, %v735_v8  ;;  %v469_v1 = vunpack.c.h.bf16 %v467_v56 }
  0xd7   :  { %v211_v11 = vmul.f32 %v209_v9, %v737_v22 }
  0xd8   :  { %v212_v12 = vadd.f32 1.0, %v210_v10  ;;  %v215_v14 = vmul.f32 -0.5, %v210_v10  ;;  %v218_v17 = vand.u32 2147483647, %v210_v10 }
  0xd9   :  { %v221_v13 = vadd.f32 1.0, %v211_v11  ;;  %v224_v15 = vmul.f32 -0.5, %v211_v11  ;;  %v227_v19 = vand.u32 2147483647, %v211_v11 }
  0xda   :  { %513 = vlog2.f32 %v212_v12  ;;  %v216_v16 = vadd.f32 1.0, %v215_v14  ;;  %vm219_vm0 = vcmp.lt.f32.partialorder %v218_v17, 0.0004427343  ;;  %v331_v14 = vmul.f32 %v468_v63, %v330_v4 }
  0xdb   :  { %515 = vlog2.f32 %v221_v13  ;;  %v225_v18 = vadd.f32 1.0, %v224_v15  ;;  %vm228_vm1 = vcmp.lt.f32.partialorder %v227_v19, 0.0004427343  ;;  %v322_v13 = vmul.f32 %v464_v62, %v321_v3  ;;  %v475_v19 = vld [vmem:[#allocation10 + $0x18] sm:$0xff]  }
  0xdc   :  { %v217_v24 = vmul.f32 %v216_v16, %v210_v10  ;;  %v472_v15 = vunpack.c.l.bf16 %v471_v5 }
  0xdd   :  { %v226_v26 = vmul.f32 %v225_v18, %v211_v11  ;;  %v654_v11 = vmov -0.0036734284   ;;  %v341_v18 = vstv %s783_s20 }
  0xe7   :  { %v514_v20 = vpop.eup %513 }
  0xe8   :  { %v516_v21 = vpop.eup %515  ;;  %v214_v23 = vmul.f32 0.6931472, %v514_v20 }
  0xe9   :  { %v223_v25 = vmul.f32 0.6931472, %v516_v21  ;;  %v323_v21 = vmul.f32 %v465_v7, %v321_v3 }
  0xea   :  { %v220_v27 = vsel %vm219_vm0, %v217_v24, %v214_v23  ;;  %v332_v23 = vmul.f32 %v469_v1, %v330_v4  ;;  %v473_v24 = vunpack.c.h.bf16 %v471_v5  ;;  %v374_v5 = vstv %s811_s23 }
  0xeb   :  { %v743_v28 = vsub.f32 0.0, %v220_v27  ;;  %v229_v29 = vsel %vm228_vm1, %v226_v26, %v223_v25  ;;  %v655_v27 = vmov 0.0057395077  }
  0xec   :  { %v745_v30 = vsub.f32 0.0, %v229_v29 }
  0xed   :  { %517 = vrsqrt.f32 %v743_v28  ;;  %vm238_vm2 = vcmp.eq.f32.partialorder %v743_v28, inf  ;;  %v241_v34 = vand.u32 2147483648, %v743_v28  ;;  %vm240_vm3 = vcmp.eq.f32.partialorder %v743_v28, 0.0 }
  0xee   :  { %519 = vrsqrt.f32 %v745_v30  ;;  %vm232_vm4 = vcmp.lt.f32.partialorder %v743_v28, 5.0  ;;  %vm245_vm5 = vcmp.eq.f32.partialorder %v745_v30, inf  ;;  %v248_v38 = vand.u32 2147483648, %v745_v30 }
  0xef   :  { %v451_v39 = vadd.f32 -2.5, %v743_v28  ;;  %vm247_vm6 = vcmp.eq.f32.partialorder %v745_v30, 0.0  ;;  %vm233_vm7 = vcmp.lt.f32.partialorder %v745_v30, 5.0  ;;  %v254_v45 = vsel %vm232_vm4, 2.8102264e-08, %v651_v44 }
  0xf0   :  { %v452_v46 = vadd.f32 -2.5, %v745_v30  ;;  %v256_v50 = vsel %vm232_vm4, 3.4327394e-07, %v652_v49  ;;  %v255_v52 = vsel %vm233_vm7, 2.8102264e-08, %v651_v44 }
  0xf1   :  { %v257_v57 = vsel %vm233_vm7, 3.4327394e-07, %v652_v49  ;;  %v262_v61 = vsel %vm232_vm4, -3.5233877e-06, %v653_v60  ;;  %v263_v6 = vsel %vm233_vm7, -3.5233877e-06, %v653_v60 }
  0xf2   :  { %v268_v12 = vsel %vm232_vm4, -4.3915065e-06, %v654_v11  ;;  %v269_v20 = vsel %vm233_vm7, -4.3915065e-06, %v654_v11  ;;  %v274_v29 = vsel %vm232_vm4, 0.00021858087, %v655_v27 }
  0xfa   :  { %v518_v31 = vpop.eup %517 }
  0xfb   :  { %v237_v32 = vmul.f32 %v518_v31, %v743_v28  ;;  %v520_v33 = vpop.eup %519  ;;  %v333_v31 = vadd.f32 %v331_v14, %v322_v13  ;;  %v658_v13 = vmov 1.001674  }
  0xfc   :  { %v244_v36 = vmul.f32 %v520_v33, %v745_v30  ;;  %v476_v33 = vunpack.c.l.bf16 %v475_v19  ;;  %v292_v14 = vsel %vm232_vm4, 0.24664073, %v658_v13 }
  0xfd   :  { %v239_v35 = vsel %vm238_vm2, %v743_v28, %v237_v32  ;;  %v342_v32 = vmul.f32 %v472_v15, %v341_v18 }
  0xfe   :  { %v242_v37 = vsel %vm240_vm3, %v241_v34, %v239_v35  ;;  %v246_v41 = vsel %vm245_vm5, %v745_v30, %v244_v36  ;;  %v352_v36 = vstv %s793_s21 }
  0xff   :  { %v453_v40 = vadd.f32 -3.0, %v242_v37  ;;  %v249_v42 = vsel %vm247_vm6, %v248_v38, %v246_v41  ;;  %v479_v37 = vld [vmem:[#allocation10 + $0x20] sm:$0xff]   ;;  %v275_v38 = vsel %vm233_vm7, 0.00021858087, %v655_v27  ;;  %v477_v41 = vunpack.c.h.bf16 %v475_v19 }
 0x100   :  { %v454_v47 = vadd.f32 -3.0, %v249_v42  ;;  %v480_v49 = vunpack.c.l.bf16 %v479_v37 }
 0x101   :  { %v768_v43 = vsel %vm232_vm4, %v451_v39, %v453_v40  ;;  %v334_v39 = vadd.f32 %v332_v23, %v323_v21  ;;  %v343_v40 = vmul.f32 %v473_v24, %v341_v18  ;;  %v491_v18 = vld [vmem:[#allocation10 + $0x38] sm:$0xff]   ;;  %v385_v21 = vstv %s820_s24 }
 0x102   :  { %v258_v48 = vmul.f32 %v254_v45, %v768_v43  ;;  %v778_v51 = vsel %vm233_vm7, %v452_v46, %v454_v47  ;;  %v656_v45 = vmov -0.0076224613   ;;  %v344_v47 = vadd.f32 %v342_v32, %v333_v31 }
 0x103   :  { %v259_v54 = vmul.f32 %v255_v52, %v778_v51  ;;  %v280_v46 = vsel %vm232_vm4, -0.001253725, %v656_v45  ;;  %v281_v55 = vsel %vm233_vm7, -0.001253725, %v656_v45  ;;  %v345_v56 = vadd.f32 %v343_v40, %v334_v39 }
 0x104   :  { %v260_v53 = vadd.f32 %v258_v48, %v256_v50  ;;  %v353_v48 = vmul.f32 %v476_v33, %v352_v36  ;;  %v293_v23 = vsel %vm233_vm7, 0.24664073, %v658_v13  ;;  %v492_v31 = vunpack.c.l.bf16 %v491_v18 }
 0x105   :  { %v261_v59 = vadd.f32 %v259_v54, %v257_v57  ;;  %v483_v54 = vld [vmem:[#allocation10 + $0x28] sm:$0xff]   ;;  %v354_v57 = vmul.f32 %v477_v41, %v352_v36  ;;  %v659_v32 = vmov 2.8329768   ;;  %v493_v39 = vunpack.c.h.bf16 %v491_v18 }
 0x106   :  { %v264_v58 = vmul.f32 %v260_v53, %v768_v43  ;;  %v363_v53 = vstv %s802_s22  ;;  %v355_v63 = vadd.f32 %v353_v48, %v344_v47  ;;  %v298_v33 = vsel %vm232_vm4, 1.5014094, %v659_v32 }
 0x107   :  { %v265_v2 = vmul.f32 %v261_v59, %v778_v51  ;;  %v356_v1 = vadd.f32 %v354_v57, %v345_v56  ;;  %v396_v40 = vstv %s829_s25  ;;  %v299_v41 = vsel %vm233_vm7, 1.5014094, %v659_v32  ;;  %v403_v56 = vld [vmem:[#allocation5] sm:$0xff]  ;;  %v406_v57 = vld [vmem:[#allocation8 + $0x8] sm:$0xff] }
 0x108   :  { %v266_v0 = vadd.f32 %v264_v58, %v262_v61  ;;  %v481_v58 = vunpack.c.h.bf16 %v479_v37  ;;  %v657_v61 = vmov 0.0094388705   ;;  %v308_v45 = vmul.f32 inf, %v735_v8 }
 0x109   :  { %v267_v10 = vadd.f32 %v265_v2, %v263_v6  ;;  %v286_v62 = vsel %vm232_vm4, -0.0041776816, %v657_v61  ;;  %v484_v2 = vunpack.c.l.bf16 %v483_v54  ;;  %v487_v6 = vld [vmem:[#allocation10 + $0x30] sm:$0xff]   ;;  %v287_v7 = vsel %vm233_vm7, -0.0041776816, %v657_v61 }
 0x10a   :  { %v270_v9 = vmul.f32 %v266_v0, %v768_v43  ;;  %v364_v0 = vmul.f32 %v480_v49, %v363_v53  ;;  %v397_v48 = vmul.f32 %v492_v31, %v396_v40  ;;  %v309_v49 = vmul.f32 inf, %v737_v22 }
 0x10b   :  { %v271_v17 = vmul.f32 %v267_v10, %v778_v51  ;;  %v485_v10 = vunpack.c.h.bf16 %v483_v54  ;;  %v398_v54 = vmul.f32 %v493_v39, %v396_v40 }
 0x10c   :  { %v272_v16 = vadd.f32 %v270_v9, %v268_v12  ;;  %v365_v9 = vmul.f32 %v481_v58, %v363_v53  ;;  %v366_v15 = vadd.f32 %v364_v0, %v355_v63 }
 0x10d   :  { %v273_v26 = vadd.f32 %v271_v17, %v269_v20  ;;  %v488_v17 = vunpack.c.l.bf16 %v487_v6 }
 0x10e   :  { %v276_v25 = vmul.f32 %v272_v16, %v768_v43  ;;  %v375_v16 = vmul.f32 %v484_v2, %v374_v5  ;;  %v367_v24 = vadd.f32 %v365_v9, %v356_v1 }
 0x10f   :  { %v277_v35 = vmul.f32 %v273_v26, %v778_v51  ;;  %v489_v26 = vunpack.c.h.bf16 %v487_v6  ;;  %v386_v36 = vmul.f32 %v488_v17, %v385_v21 }
 0x110   :  { %v278_v34 = vadd.f32 %v276_v25, %v274_v29  ;;  %v376_v25 = vmul.f32 %v485_v10, %v374_v5 }
 0x111   :  { %v279_v44 = vadd.f32 %v277_v35, %v275_v38  ;;  %v377_v35 = vadd.f32 %v375_v16, %v366_v15 }
 0x112   :  { %v282_v42 = vmul.f32 %v278_v34, %v768_v43  ;;  %v304_v34 = vand.u32 2147483647, %v735_v8 }
 0x113   :  { %v283_v52 = vmul.f32 %v279_v44, %v778_v51  ;;  %v387_v44 = vmul.f32 %v489_v26, %v385_v21  ;;  %v388_v47 = vadd.f32 %v386_v36, %v377_v35 }
 0x114   :  { %v284_v50 = vadd.f32 %v282_v42, %v280_v46  ;;  %v378_v42 = vadd.f32 %v376_v25, %v367_v24  ;;  %vm306_vm8 = vcmp.eq.f32.partialorder %v304_v34, 1.0 }
 0x115   :  { %v285_v60 = vadd.f32 %v283_v52, %v281_v55  ;;  %v405_v52 = vld [vmem:[#allocation8] sm:$0xff]  ;;  %v399_v58 = vadd.f32 %v397_v48, %v388_v47 }
 0x116   :  { %v288_v59 = vmul.f32 %v284_v50, %v768_v43  ;;  %v389_v53 = vadd.f32 %v387_v44, %v378_v42 }
 0x117   :  { %v289_v4 = vmul.f32 %v285_v60, %v778_v51  ;;  %v404_v60 = vld [vmem:[#allocation5 + $0x8] sm:$0xff] }
 0x118   :  { %v290_v3 = vadd.f32 %v288_v59, %v286_v62  ;;  %v400_v61 = vadd.f32 %v398_v54, %v389_v53 }
 0x119   :  { %v291_v12 = vadd.f32 %v289_v4, %v287_v7 }
 0x11a   :  { %v294_v11 = vmul.f32 %v290_v3, %v768_v43 }
 0x11b   :  { %v295_v20 = vmul.f32 %v291_v12, %v778_v51 }
 0x11c   :  { %v296_v19 = vadd.f32 %v294_v11, %v292_v14 }
 0x11d   :  { %v297_v29 = vadd.f32 %v295_v20, %v293_v23 }
 0x11e   :  { %v300_v27 = vmul.f32 %v296_v19, %v768_v43  ;;  %v305_v43 = vand.u32 2147483647, %v737_v22 }
 0x11f   :  { %v301_v38 = vmul.f32 %v297_v29, %v778_v51 }
 0x120   :  { %v302_v37 = vadd.f32 %v300_v27, %v298_v33  ;;  %vm307_vm9 = vcmp.eq.f32.partialorder %v305_v43, 1.0 }
 0x121   :  { %v303_v46 = vadd.f32 %v301_v38, %v299_v41 }
 0x122   :  { %v310_v28 = vmul.f32 %v302_v37, %v735_v8 }
 0x123   :  { %v311_v51 = vmul.f32 %v303_v46, %v737_v22 }
 0x124   :  { %v312_v50 = vsel %vm306_vm8, %v308_v45, %v310_v28 }
 0x125   :  { %v314_v30 = vmul.f32 1.4142135, %v312_v50  ;;  %v313_v55 = vsel %vm307_vm9, %v309_v49, %v311_v51 }
 0x126   :  { %v315_v8 = vmul.f32 1.4142135, %v313_v55 }
 0x127   :  { %v407_v59 = vmul.f32 %v405_v52, %v314_v30  ;;  %401 = vst [vmem:[#allocation12] sm:$0xff] %v314_v30 }
 0x128   :  { %v408_v62 = vmul.f32 %v406_v57, %v315_v8  ;;  %402 = vst [vmem:[#allocation12 + $0x8] sm:$0xff] %v315_v8 }
 0x129   :  { %v409_v22 = vadd.f32 %v407_v59, %v403_v56 }
 0x12a   :  { %604 = shalt.err (!%p601_p10)
}
 0x12b   :  { %438 = dma.vmem_to_hbm [thread:$0]  %s433_s27, 256, %s871_s6, [#allocation13], %s646_s30, %s646_s30, %s647_s7   ;;  %v410_v63 = vadd.f32 %v408_v62, %v404_v60  ;;  %v411_v0 = vadd.f32 %v409_v22, %v399_v58 }
 0x12c   :  { %s613_s10 = scalar_lea.vmem %s421_s28, 256  ;;  %p618_p12 = scmp.lt.s32.totalorder %s421_s28, %s421_s28 }
 0x12d   :  { %v412_v2 = vadd.f32 %v410_v63, %v400_v61  ;;  %413 = vst [vmem:[#allocation11] sm:$0xff] %v411_v0  ;;  %p614_p11 = scmp.ne.s32.totalorder %s421_s28, %s613_s10  ;;  %p619_p13 = scmp.lt.s32.totalorder %s613_s10, %s613_s10 }
 0x12f   :  { %414 = vst [vmem:[#allocation11 + $0x8] sm:$0xff] %v412_v2  ;;  %p620_p0 = por %p619_p13, %p618_p12 }
 0x131   :  { %p621_p1 = pnand %p620_p0, %p614_p11 }
 0x133   :  { %624 = shalt.err (!%p621_p1)
}
 0x134   :  { %426 = dma.vmem_to_hbm [thread:$0]  %s421_s28, 256, %s870_s5, [#allocation7], %s646_s30, %s646_s30, %s647_s7  }
 0x135   :  { %639 = dma.done.wait [#allocation7], 256  }
 0x136   :  { %640 = vsyncadd [#allocation7], 4294967040 }
 0x137   :  { %641 = dma.done.wait [#allocation13], 256  }
 0x138   :  { %642 = vsyncadd [#allocation13], 4294967040 }
 0x139   :  { %445 = vsyncpa [#allocation6], 1 }
 0x13a   :  { %446 = vsyncpa [#allocation9], 1 }
 0x13b   :  { %447 = vsyncpa [#allocation7], 1 }
 0x13c   :  { %448 = vsyncpa [#allocation13], 1 }

// kernel: tpu_custom_call.1
= control target key start
LH: loop header
LB: loop body
LE: loop exit
PB: predicated region body
PF: predicated region fallthrough
CT: control target
= control target key end

     0   :  { %s363_s18 = smov [#allocation3]   ;;  %s457_s0 = inlined_call_operand.hbm [shape: f32[8], index: 0, kind: input, shape index: {}]   ;;  %s458_s1 = inlined_call_operand.hbm [shape: f32[16,128], index: 1, kind: input, shape index: {}]   ;;  %s459_s2 = inlined_call_operand.hbm [shape: f32[16,128], index: 2, kind: input, shape index: {}]   ;;  %s460_s3 = inlined_call_operand.hbm [shape: bf16[1,8,16,128], index: 3, kind: input, shape index: {}]   ;;  %s461_s4 = inlined_call_operand.hbm [shape: f32[16,128], index: 4, kind: input, shape index: {}]   ;;  %s462_s5 = inlined_call_operand.hbm [shape: f32[16,128], index: 5, kind: output, shape index: {}]  }
   0x1   :  { %11 = dma.hbm_to_smem %s457_s0, 16, %s363_s18, [#allocation2] }
   0x2   :  { %353 = dma.done.wait [#allocation2], 16 }
   0x3   :  { %354 = vsyncadd [#allocation2], 4294967280 }
   0x4   :  { %13 = sfence }
   0x5   :  { %14 = vsyncpa [#allocation5], 0 }
   0x6   :  { %15 = vsyncpa [#allocation8], 0 }
   0x7   :  { %16 = vsyncpa [#allocation11], 0 }
   0x8   :  { %17 = vsyncpa [#allocation6], 0  ;;  %s364_s21 = smov [#allocation7]   ;;  %s365_s23 = smov [#allocation4]  }
   0x9   :  { %s35_s22 = sshll.u32 %s364_s21, 4  ;;  %s23_s24 = sshll.u32 %s365_s23, 4  ;;  %s36_s22 = int_to_ptr.vmem [resolvable:$true] %s35_s22  ;;  %s24_s24 = int_to_ptr.vmem [resolvable:$true] %s23_s24 }
   0xa   :  { %s261_s25 = scalar_lea.vmem %s36_s22, 256  ;;  %p266_p1 = scmp.lt.s32.totalorder %s36_s22, %s36_s22 }
   0xb   :  { %p262_p0 = scmp.ne.s32.totalorder %s36_s22, %s261_s25  ;;  %p267_p2 = scmp.lt.s32.totalorder %s261_s25, %s261_s25 }
   0xd   :  { %p268_p3 = por %p267_p2, %p266_p1 }
   0xf   :  { %p269_p4 = pnand %p268_p3, %p262_p0 }
  0x11   :  { %272 = shalt.err (!%p269_p4)
}
  0x12   :  { %s366_s0 = smov 128   ;;  %s367_s26 = smov 8  }
  0x13   :  { %41 = dma.hbm_to_vmem [thread:$0]  %s459_s2, 256, %s36_s22, [#allocation8], %s366_s0, %s366_s0, %s367_s26  }
  0x14   :  { %s281_s29 = scalar_lea.vmem %s24_s24, 256  ;;  %p286_p6 = scmp.lt.s32.totalorder %s24_s24, %s24_s24 }
  0x15   :  { %p282_p5 = scmp.ne.s32.totalorder %s24_s24, %s281_s29  ;;  %p287_p7 = scmp.lt.s32.totalorder %s281_s29, %s281_s29 }
  0x17   :  { %p288_p8 = por %p287_p7, %p286_p6 }
  0x19   :  { %p289_p9 = pnand %p288_p8, %p282_p5 }
  0x1b   :  { %292 = shalt.err (!%p289_p9)
}
  0x1c   :  { %29 = dma.hbm_to_vmem [thread:$0]  %s458_s1, 256, %s24_s24, [#allocation5], %s366_s0, %s366_s0, %s367_s26  }
  0x1d   :  { %s368_s7 = smov [#allocation9]  }
  0x1e   :  { %s47_s8 = sshll.u32 %s368_s7, 4  ;;  %s48_s8 = int_to_ptr.vmem [resolvable:$true] %s47_s8 }
  0x1f   :  { %s301_s9 = scalar_lea.vmem %s48_s8, 1024  ;;  %p306_p11 = scmp.lt.s32.totalorder %s48_s8, %s48_s8 }
  0x20   :  { %p302_p10 = scmp.ne.s32.totalorder %s48_s8, %s301_s9  ;;  %p307_p12 = scmp.lt.s32.totalorder %s301_s9, %s301_s9 }
  0x22   :  { %p308_p13 = por %p307_p12, %p306_p11 }
  0x24   :  { %p309_p0 = pnand %p308_p13, %p302_p10 }
  0x26   :  { %312 = shalt.err (!%p309_p0)
}
  0x27   :  { %s369_s2 = smov 64   ;;  %s370_s10 = smov 4  }
  0x28   :  { %53 = dma.hbm_to_vmem [thread:$0]  %s460_s3, 1024, %s48_s8, [#allocation8], %s369_s2, %s369_s2, %s370_s10  }
  0x29   :  { %s371_s13 = smov [#allocation10]  }
  0x2a   :  { %s59_s14 = sshll.u32 %s371_s13, 4  ;;  %s60_s14 = int_to_ptr.vmem [resolvable:$true] %s59_s14 }
  0x2b   :  { %s321_s1 = scalar_lea.vmem %s60_s14, 256  ;;  %p326_p2 = scmp.lt.s32.totalorder %s60_s14, %s60_s14 }
  0x2c   :  { %p322_p1 = scmp.ne.s32.totalorder %s60_s14, %s321_s1  ;;  %p327_p3 = scmp.lt.s32.totalorder %s321_s1, %s321_s1 }
  0x2e   :  { %p328_p4 = por %p327_p3, %p326_p2 }
  0x30   :  { %p329_p5 = pnand %p328_p4, %p322_p1 }
  0x32   :  { %332 = shalt.err (!%p329_p5)
}
  0x33   :  { %65 = dma.hbm_to_vmem [thread:$0]  %s461_s4, 256, %s60_s14, [#allocation11], %s366_s0, %s366_s0, %s367_s26  }
  0x34   :  { %355 = dma.done.wait [#allocation5], 256  }
  0x35   :  { %356 = vsyncadd [#allocation5], 4294967040 }
  0x36   :  { %357 = dma.done.wait [#allocation8], 1280  }
  0x37   :  { %358 = vsyncadd [#allocation8], 4294966016 }
  0x38   :  { %359 = dma.done.wait [#allocation11], 256  }
  0x39   :  { %360 = vsyncadd [#allocation11], 4294967040  ;;  %s427_s3 = sld [smem:[#allocation3]]  ;;  %v204_v0 = vld [vmem:[#allocation9] sm:$0xff]   ;;  %v208_v2 = vld [vmem:[#allocation9 + $0x8] sm:$0xff]   ;;  %s372_s23 = smov [#allocation12]  }
  0x3a   :  { %s429_s17 = sld [smem:[#allocation3 + $0x1]]  ;;  %v212_v3 = vld [vmem:[#allocation9 + $0x10] sm:$0xff]   ;;  %v205_v4 = vunpack.c.l.bf16 %v204_v0  ;;  %v209_v5 = vunpack.c.l.bf16 %v208_v2  ;;  %v216_v8 = vld [vmem:[#allocation9 + $0x18] sm:$0xff]   ;;  %v220_v9 = vld [vmem:[#allocation9 + $0x20] sm:$0xff]   ;;  %v206_v25 = vunpack.c.h.bf16 %v204_v0  ;;  %v210_v26 = vunpack.c.h.bf16 %v208_v2  ;;  %s182_s24 = sshll.u32 %s372_s23, 4  ;;  %s183_s24 = int_to_ptr.vmem [resolvable:$true] %s182_s24 }
  0x3b   :  { %s431_s18 = sld [smem:[#allocation3 + $0x2]]  ;;  %v213_v7 = vunpack.c.l.bf16 %v212_v3  ;;  %v217_v11 = vunpack.c.l.bf16 %v216_v8  ;;  %v221_v12 = vunpack.c.l.bf16 %v220_v9  ;;  %v224_v13 = vld [vmem:[#allocation9 + $0x28] sm:$0xff]   ;;  %v228_v19 = vld [vmem:[#allocation9 + $0x30] sm:$0xff]   ;;  %v232_v20 = vld [vmem:[#allocation9 + $0x38] sm:$0xff]   ;;  %v214_v36 = vunpack.c.h.bf16 %v212_v3  ;;  %s333_s25 = scalar_lea.vmem %s183_s24, 256 }
  0x3c   :  { %s433_s19 = sld [smem:[#allocation3 + $0x3]]  ;;  %v225_v23 = vunpack.c.l.bf16 %v224_v13  ;;  %v229_v29 = vunpack.c.l.bf16 %v228_v19  ;;  %v233_v30 = vunpack.c.l.bf16 %v232_v20  ;;  %v165_v32 = vld [vmem:[#allocation7] sm:$0xff]  ;;  %v167_v33 = vld [vmem:[#allocation10] sm:$0xff]  ;;  %v218_v39 = vunpack.c.h.bf16 %v216_v8  ;;  %v166_v55 = vld [vmem:[#allocation7 + $0x8] sm:$0xff]  ;;  %p334_p6 = scmp.ne.s32.totalorder %s183_s24, %s333_s25 }
  0x3d   :  { %s435_s20 = sld [smem:[#allocation3 + $0x4]]  ;;  %v222_v40 = vunpack.c.h.bf16 %v220_v9  ;;  %v226_v44 = vunpack.c.h.bf16 %v224_v13  ;;  %v169_v47 = vmul.f32 %v167_v33, %v165_v32  ;;  %v163_v49 = vld [vmem:[#allocation4] sm:$0xff]  ;;  %v230_v52 = vunpack.c.h.bf16 %v228_v19  ;;  %v168_v56 = vld [vmem:[#allocation10 + $0x8] sm:$0xff]  ;;  %p338_p7 = scmp.lt.s32.totalorder %s183_s24, %s183_s24 }
  0x3e   :  { %s437_s4 = sld [smem:[#allocation3 + $0x5]]  ;;  %v234_v59 = vunpack.c.h.bf16 %v232_v20  ;;  %v170_v0 = vmul.f32 %v168_v56, %v166_v55  ;;  %v164_v2 = vld [vmem:[#allocation4 + $0x8] sm:$0xff]  ;;  %p339_p8 = scmp.lt.s32.totalorder %s333_s25, %s333_s25 }
  0x3f   :  { %v83_v1 = vstv %s427_s3  ;;  %s440_s21 = sld [smem:[#allocation3 + $0x6]]  ;;  %v171_v61 = vadd.f32 %v169_v47, %v163_v49 }
  0x40   :  { %v92_v6 = vstv %s429_s17  ;;  %s444_s22 = sld [smem:[#allocation3 + $0x7]]  ;;  %v84_v14 = vmul.f32 %v205_v4, %v83_v1  ;;  %v85_v34 = vmul.f32 %v206_v25, %v83_v1  ;;  %p340_p9 = por %p339_p8, %p338_p7 }
  0x41   :  { %v103_v10 = vstv %s431_s18  ;;  %v93_v15 = vmul.f32 %v209_v5, %v92_v6  ;;  %v94_v35 = vmul.f32 %v210_v26, %v92_v6 }
  0x42   :  { %v104_v16 = vmul.f32 %v213_v7, %v103_v10  ;;  %v114_v17 = vstv %s433_s19  ;;  %v105_v43 = vmul.f32 %v214_v36, %v103_v10  ;;  %v172_v7 = vadd.f32 %v170_v0, %v164_v2  ;;  %p341_p10 = pnand %p340_p9, %p334_p6 }
  0x43   :  { %v125_v18 = vstv %s435_s20  ;;  %v95_v21 = vadd.f32 %v93_v15, %v84_v14  ;;  %v115_v22 = vmul.f32 %v217_v11, %v114_v17  ;;  %v96_v42 = vadd.f32 %v94_v35, %v85_v34 }
  0x44   :  { %v136_v24 = vstv %s437_s4  ;;  %v126_v28 = vmul.f32 %v221_v12, %v125_v18  ;;  %v116_v48 = vmul.f32 %v218_v39, %v114_v17  ;;  %v127_v51 = vmul.f32 %v222_v40, %v125_v18 }
  0x45   :  { %v106_v27 = vadd.f32 %v104_v16, %v95_v21  ;;  %v147_v31 = vstv %s440_s21  ;;  %v137_v38 = vmul.f32 %v225_v23, %v136_v24  ;;  %v107_v50 = vadd.f32 %v105_v43, %v96_v42 }
  0x46   :  { %v158_v41 = vstv %s444_s22  ;;  %v148_v46 = vmul.f32 %v229_v29, %v147_v31  ;;  %v138_v58 = vmul.f32 %v226_v44, %v136_v24  ;;  %v149_v63 = vmul.f32 %v230_v52, %v147_v31 }
  0x47   :  { %v117_v37 = vadd.f32 %v115_v22, %v106_v27  ;;  %v159_v54 = vmul.f32 %v233_v30, %v158_v41  ;;  %v118_v57 = vadd.f32 %v116_v48, %v107_v50  ;;  %v160_v4 = vmul.f32 %v234_v59, %v158_v41 }
  0x49   :  { %v128_v45 = vadd.f32 %v126_v28, %v117_v37  ;;  %v129_v62 = vadd.f32 %v127_v51, %v118_v57 }
  0x4b   :  { %v139_v53 = vadd.f32 %v137_v38, %v128_v45  ;;  %v140_v3 = vadd.f32 %v138_v58, %v129_v62 }
  0x4d   :  { %v150_v60 = vadd.f32 %v148_v46, %v139_v53  ;;  %v151_v6 = vadd.f32 %v149_v63, %v140_v3 }
  0x4f   :  { %v161_v1 = vadd.f32 %v159_v54, %v150_v60  ;;  %v162_v8 = vadd.f32 %v160_v4, %v151_v6 }
  0x51   :  { %v173_v5 = vadd.f32 %v171_v61, %v161_v1  ;;  %v174_v9 = vadd.f32 %v172_v7, %v162_v8 }
  0x53   :  { %175 = vst [vmem:[#allocation12] sm:$0xff] %v173_v5  ;;  %176 = vst [vmem:[#allocation12 + $0x8] sm:$0xff] %v174_v9 }
  0x54   :  { %344 = shalt.err (!%p341_p10)
}
  0x55   :  { %188 = dma.vmem_to_hbm [thread:$0]  %s183_s24, 256, %s462_s5, [#allocation6], %s366_s0, %s366_s0, %s367_s26  }
  0x56   :  { %361 = dma.done.wait [#allocation6], 256  }
  0x57   :  { %362 = vsyncadd [#allocation6], 4294967040 }
  0x58   :  { %192 = vsyncpa [#allocation5], 1 }
  0x59   :  { %193 = vsyncpa [#allocation8], 1 }
  0x5a   :  { %194 = vsyncpa [#allocation11], 1 }
  0x5b   :  { %195 = vsyncpa [#allocation6], 1 }

</bundles_post_ra>
